<compile_context>
chip_gen: v7x
topology: tpu7x:2x2x1
jax: 0.10.0
libtpu: 0.0.40
codegen_flags: <defaults>
</compile_context>

<pallas_src>
import functools

import jax
import jax.numpy as jnp
from jax.experimental import pallas as pl
from jax.experimental.pallas import tpu as pltpu

LANE = 128    # lane width: intermediate feature widths / logits padded to this
TB_MAX = 128  # max batch rows per grid step


# -----------------------------------------------------------------------------
# Fused Pallas kernel
# -----------------------------------------------------------------------------

def _fused_vqa_kernel(patch_ref, tf_ref,
                      wc_ref,                       # conv stem (bias folded in)
                      wt1_ref, wi1_ref, b1_ref,     # projections folded into head L1
                      w2_ref, b2_ref,               # head layer 2
                      w3_ref, b3_ref,               # head output (lane-padded)
                      o_ref, *, tb, p):
    """Fused image stem + folded projections + classification head.

    patch_ref : [tb*p, KP]  bf16  im2col 3x3 patches; lane K holds 1.0 (bias)
    tf_ref    : [tb, Ht]    bf16  pooled text features
    o_ref     : [tb, 128]   f32   lane-padded logits (sliced to d_out outside)
    """
    f32 = jnp.float32
    bf16 = jnp.bfloat16

    # ---- image stem: 3x3 conv as ONE 2-D MXU matmul (conv bias folded into
    # the ones lane of the patches), ReLU, global average pool.  Lane-dense.
    feat = jnp.dot(patch_ref[...], wc_ref[...], preferred_element_type=f32)
    feat = jnp.maximum(feat, 0.0)                                   # [tb*p, 128] f32
    img = jnp.mean(feat.reshape(tb, p, feat.shape[-1]), axis=1)     # [tb, 128]   f32

    # ---- head layer 1 with the text/image projections folded in:
    #   h1 = relu(tf @ (wt@w1[:E]) + img @ (wi@w1[E:]) + (bt@w1[:E]+bi@w1[E:]+b1))
    h1 = (jnp.dot(tf_ref[...], wt1_ref[...], preferred_element_type=f32)
          + jnp.dot(img.astype(bf16), wi1_ref[...], preferred_element_type=f32)
          + b1_ref[...])
    h1 = jnp.maximum(h1, 0.0)                                       # ReLU (dropout = eval identity)

    # ---- head layer 2
    h2 = jnp.dot(h1.astype(bf16), w2_ref[...], preferred_element_type=f32) + b2_ref[...]
    h2 = jnp.maximum(h2, 0.0)                                       # ReLU (dropout = eval identity)

    # ---- output layer (128-wide, unmasked lane-dense store)
    o_ref[...] = jnp.dot(h2.astype(bf16), w3_ref[...],
                         preferred_element_type=f32) + b3_ref[...]


# -----------------------------------------------------------------------------
# Host-side glue
# -----------------------------------------------------------------------------

def _im2col_3x3_f32(image_nchw):
    """[B, C, H, W] -> [B, H*W, C*9] patches (f32).  Only the tiny raw image is
    transposed; the 9x-expanded patches are produced directly in row-major
    order (same-padding 3x3)."""
    B, C, H, W = image_nchw.shape
    x = jnp.transpose(image_nchw, (0, 2, 3, 1))                 # [B, H, W, C] (small)
    xp = jnp.pad(x, ((0, 0), (1, 1), (1, 1), (0, 0)))
    shifts = [xp[:, di:di + H, dj:dj + W, :] for di in range(3) for dj in range(3)]
    patches = jnp.stack(shifts, axis=-1)                        # [B, H, W, C, 9]
    return patches.reshape(B, H * W, C * 9)


def vqa_forward(image, question_ids, initial_hidden, params, *, tb_max=TB_MAX):
    """Mirrors VQAModel.forward (initial_hidden accepted but unused)."""
    del initial_hidden  # matches the reference: accepted but not used

    B = image.shape[0]
    f32, bf16 = jnp.float32, jnp.bfloat16

    # ---- text backbone stand-in (tokenizer + BERT trunk) ----
    # TODO(synk): pretrained BertForSequenceClassification trunk not reproduced;
    # stand-in = token-embedding gather + mean pool at reduced width.
    tok = jnp.take(params["embed_table"], question_ids, axis=0)       # [B, T, Ht]
    text_feat = jnp.mean(tok, axis=1)                                 # [B, Ht] f32

    # ---- image backbone stand-in (resnet18 trunk): im2col for the conv stem.
    # TODO(synk): pretrained resnet18 trunk not reproduced.
    patches = _im2col_3x3_f32(image)                                  # [B, P, K]
    P, K = patches.shape[1], patches.shape[2]

    # Append a ones lane (for the folded conv bias) and pad K only to the next
    # multiple of 8 -- NOT to 128 -- so the dominant HBM stream stays small.
    KP = pl.cdiv(K + 1, 8) * 8
    patches = jnp.concatenate(
        [patches,
         jnp.ones((B, P, 1), f32),
         jnp.zeros((B, P, KP - K - 1), f32)], axis=-1)                # [B, P, KP]

    # ---- minimal batch padding; no forced multi-step grid on 1-TC parts.
    # TODO(synk): on v7x force >=2 grid steps per TensorCore when B is large.
    if B > tb_max:
        tb = tb_max
        b_pad = pl.cdiv(B, tb) * tb
    else:
        b_pad = pl.cdiv(B, 8) * 8     # minimal sublane-friendly padding
        tb = b_pad
    grid = (b_pad // tb,)

    patches = jnp.pad(patches, ((0, b_pad - B), (0, 0), (0, 0)))
    patches = patches.reshape(b_pad * P, KP).astype(bf16)             # [b_pad*P, KP] bf16
    text_feat = jnp.pad(text_feat, ((0, b_pad - B), (0, 0))).astype(bf16)

    # ---- sizes / lane padding targets
    Ht = params["wt"].shape[0]
    E = params["wt"].shape[1]
    Hi = params["wi"].shape[0]
    Hch = params["w2"].shape[0]
    d_out = params["w3"].shape[1]
    Hi_p = pl.cdiv(Hi, LANE) * LANE
    Hch_p = pl.cdiv(Hch, LANE) * LANE
    Do_p = pl.cdiv(d_out, LANE) * LANE

    # ---- weight prep: all folding/padding in f32, single bf16 cast at the end.
    # conv stem weight [KP, Hi_p]; conv bias folded into row K (the ones lane).
    wc = jnp.zeros((KP, Hi_p), f32)
    wc = wc.at[:K, :Hi].set(params["wc"])
    wc = wc.at[K, :Hi].set(params["bc"][0])
    wc = wc.astype(bf16)

    # fold text/image projections into head layer 1 (exact: no nonlinearity
    # between the projections and layer 1).
    w1t, w1i = params["w1"][:E], params["w1"][E:]
    wt1 = params["wt"] @ w1t                                          # [Ht, Hch]
    wi1 = params["wi"] @ w1i                                          # [Hi, Hch]
    b1f = params["bt"] @ w1t + params["bi"] @ w1i + params["b1"]      # [1, Hch]

    wt1 = jnp.zeros((Ht, Hch_p), f32).at[:, :Hch].set(wt1).astype(bf16)
    wi1 = jnp.zeros((Hi_p, Hch_p), f32).at[:Hi, :Hch].set(wi1).astype(bf16)
    b1f = jnp.zeros((1, Hch_p), f32).at[:, :Hch].set(b1f)
    w2 = jnp.zeros((Hch_p, Hch_p), f32).at[:Hch, :Hch].set(params["w2"]).astype(bf16)
    b2 = jnp.zeros((1, Hch_p), f32).at[:, :Hch].set(params["b2"])
    w3 = jnp.zeros((Hch_p, Do_p), f32).at[:Hch, :d_out].set(params["w3"]).astype(bf16)
    b3 = jnp.zeros((1, Do_p), f32).at[:, :d_out].set(params["b3"])

    def _const(shape):
        # TODO(synk): at real backbone widths (768/512) add
        # pipeline_mode=pl.Buffered(1) to these constant-index weights to
        # reclaim v7x VMEM.
        return pl.BlockSpec(shape, lambda i: (0, 0))

    in_specs = [
        pl.BlockSpec((tb * P, KP), lambda i: (i, 0)),   # patches (batch-tiled)
        pl.BlockSpec((tb, Ht), lambda i: (i, 0)),       # text features (batch-tiled)
        _const((KP, Hi_p)),                             # wc (bias folded)
        _const((Ht, Hch_p)), _const((Hi_p, Hch_p)), _const((1, Hch_p)),  # wt1, wi1, b1'
        _const((Hch_p, Hch_p)), _const((1, Hch_p)),     # w2, b2
        _const((Hch_p, Do_p)), _const((1, Do_p)),       # w3, b3 (lane-padded)
    ]
    out_specs = pl.BlockSpec((tb, Do_p), lambda i: (i, 0))

    args = (patches, text_feat, wc, wt1, wi1, b1f, w2, b2, w3, b3)
    flops = 2 * b_pad * (P * (K + 1) * Hi + Ht * Hch + Hi * Hch
                         + Hch * Hch + Hch * d_out)
    bytes_accessed = int(sum(a.size * a.dtype.itemsize for a in args)
                         + b_pad * Do_p * 4)

    out = pl.pallas_call(
        functools.partial(_fused_vqa_kernel, tb=tb, p=P),
        out_shape=jax.ShapeDtypeStruct((b_pad, Do_p), jnp.float32),
        grid=grid,
        in_specs=in_specs,
        out_specs=out_specs,
        compiler_params=pltpu.CompilerParams(
            dimension_semantics=("parallel",)),     # megacore sharding on v7x
        cost_estimate=pl.CostEstimate(
            flops=flops, transcendentals=0, bytes_accessed=bytes_accessed),
    )(*args)

    return out[:B, :d_out]


# -----------------------------------------------------------------------------
# Pure-JAX reference (same stand-in backbones) for a numerical sanity check
# -----------------------------------------------------------------------------

def _reference_forward(image, question_ids, params):
    tok = jnp.take(params["embed_table"], question_ids, axis=0)
    text_feat = jnp.mean(tok, axis=1)
    patches = _im2col_3x3_f32(image)                                   # [B, P, K]
    feat = jnp.maximum(
        jnp.einsum("bpk,kh->bph", patches, params["wc"]) + params["bc"], 0.0)
    img_feat = jnp.mean(feat, axis=1)
    q = text_feat @ params["wt"] + params["bt"]
    v = img_feat @ params["wi"] + params["bi"]
    z = jnp.concatenate([q, v], axis=1)
    h1 = jnp.maximum(z @ params["w1"] + params["b1"], 0.0)
    h2 = jnp.maximum(h1 @ params["w2"] + params["b2"], 0.0)
    return h2 @ params["w3"] + params["b3"]


# -----------------------------------------------------------------------------
# Deterministic parameter init (f32 masters; bf16 casts happen at the kernel)
# -----------------------------------------------------------------------------

def init_params(key, *, vocab, h_text, h_image, c_in, emb, h_ch, d_out):
    ks = jax.random.split(key, 12)
    s = 0.05
    f32 = jnp.float32
    return {
        "embed_table": s * jax.random.normal(ks[0], (vocab, h_text), f32),
        "wc": s * jax.random.normal(ks[1], (c_in * 9, h_image), f32),
        "bc": s * jax.random.normal(ks[2], (1, h_image), f32),
        # text_model.classifier : Linear(h_text -> emb)
        "wt": s * jax.random.normal(ks[3], (h_text, emb), f32),
        "bt": s * jax.random.normal(ks[4], (1, emb), f32),
        # image_model.fc : Linear(h_image -> emb)
        "wi": s * jax.random.normal(ks[5], (h_image, emb), f32),
        "bi": s * jax.random.normal(ks[6], (1, emb), f32),
        # classification head MLP (w1 rows ordered [text | image] to match concat)
        "w1": s * jax.random.normal(ks[7], (2 * emb, h_ch), f32),
        "b1": s * jax.random.normal(ks[8], (1, h_ch), f32),
        "w2": s * jax.random.normal(ks[9], (h_ch, h_ch), f32),
        "b2": s * jax.random.normal(ks[10], (1, h_ch), f32),
        "w3": s * jax.random.normal(ks[11], (h_ch, d_out), f32),
        "b3": jnp.zeros((1, d_out), f32),
    }


if __name__ == "__main__":
    # Small shapes consistent with the module's forward signature.
    B, C, H, W = 2, 3, 16, 16
    T = 8                      # question token length
    VOCAB = 100
    H_TEXT = 32                # stand-in for BERT classifier.in_features (768)
    H_IMAGE = 64               # stand-in for resnet18 fc.in_features (512)
    EMB = 32                   # embedding_size
    H_CH = 32                  # hidden_size_ch
    D_OUT = 2                  # yes / no

    key = jax.random.PRNGKey(0)
    k_img, k_q, k_p = jax.random.split(key, 3)

    image = jax.random.normal(k_img, (B, C, H, W), jnp.float32)        # NCHW
    question_ids = jax.random.randint(k_q, (B, T), 0, VOCAB)           # tokenized ids
    initial_hidden = jnp.zeros((EMB,), jnp.float32)                    # unused, as in torch forward

    params = init_params(k_p, vocab=VOCAB, h_text=H_TEXT, h_image=H_IMAGE,
                         c_in=C, emb=EMB, h_ch=H_CH, d_out=D_OUT)

    fwd = jax.jit(vqa_forward)
    out = jax.block_until_ready(fwd(image, question_ids, initial_hidden, params))
    assert out.shape == (B, D_OUT) and out.dtype == jnp.float32

    ref = _reference_forward(image, question_ids, params)
    assert jnp.allclose(out, ref, rtol=1e-1, atol=1e-2), (out, ref)

    print("KERNEL_OK")
</pallas_src>

<mosaic_0001>
module attributes {stable_mosaic.version = 11 : i64} {
  func.func @_fused_vqa_kernel(%arg0: i32, %arg1: memref<2048x32xbf16, #tpu.memory_space<vmem>>, %arg2: memref<8x32xbf16, #tpu.memory_space<vmem>>, %arg3: memref<32x128xbf16, #tpu.memory_space<vmem>>, %arg4: memref<32x128xbf16, #tpu.memory_space<vmem>>, %arg5: memref<128x128xbf16, #tpu.memory_space<vmem>>, %arg6: memref<1x128xf32, #tpu.memory_space<vmem>>, %arg7: memref<128x128xbf16, #tpu.memory_space<vmem>>, %arg8: memref<1x128xf32, #tpu.memory_space<vmem>>, %arg9: memref<128x128xbf16, #tpu.memory_space<vmem>>, %arg10: memref<1x128xf32, #tpu.memory_space<vmem>>, %arg11: memref<8x128xf32, #tpu.memory_space<vmem>>) attributes {dimension_semantics = [#tpu.dimension_semantics<parallel>], iteration_bounds = array<i64: 1>, scalar_prefetch = 0 : i64, scratch_operands = 0 : i64, tpu.core_type = #tpu.core_type<tc>, window_params = [{transform_indices = @transform_0, window_bounds = array<i64: 2048, 32>}, {transform_indices = @transform_1, window_bounds = array<i64: 8, 32>}, {pipeline_mode = #tpu.pipeline_mode<synchronous>, transform_indices = @transform_2, window_bounds = array<i64: 32, 128>}, {pipeline_mode = #tpu.pipeline_mode<synchronous>, transform_indices = @transform_3, window_bounds = array<i64: 32, 128>}, {pipeline_mode = #tpu.pipeline_mode<synchronous>, transform_indices = @transform_4, window_bounds = array<i64: 128, 128>}, {pipeline_mode = #tpu.pipeline_mode<synchronous>, transform_indices = @transform_5, window_bounds = array<i64: 1, 128>}, {pipeline_mode = #tpu.pipeline_mode<synchronous>, transform_indices = @transform_6, window_bounds = array<i64: 128, 128>}, {pipeline_mode = #tpu.pipeline_mode<synchronous>, transform_indices = @transform_7, window_bounds = array<i64: 1, 128>}, {pipeline_mode = #tpu.pipeline_mode<synchronous>, transform_indices = @transform_8, window_bounds = array<i64: 128, 128>}, {pipeline_mode = #tpu.pipeline_mode<synchronous>, transform_indices = @transform_9, window_bounds = array<i64: 1, 128>}, {transform_indices = @transform_10, window_bounds = array<i64: 8, 128>}]} {
    %c0 = arith.constant 0 : index
    %c0_0 = arith.constant 0 : index
    %0 = vector.load %arg1[%c0, %c0_0] : memref<2048x32xbf16, #tpu.memory_space<vmem>>, vector<2048x32xbf16>
    %c0_1 = arith.constant 0 : index
    %c0_2 = arith.constant 0 : index
    %1 = vector.load %arg3[%c0_1, %c0_2] : memref<32x128xbf16, #tpu.memory_space<vmem>>, vector<32x128xbf16>
    %cst = arith.constant dense<0.000000e+00> : vector<2048x128xf32>
    %2 = tpu.matmul %0, %1, %cst {dimension_numbers = #tpu.dot_dimension_numbers<[1], [0], [0], [1], [0, 0, 1, 1], [], []>} : vector<2048x32xbf16>, vector<32x128xbf16>, vector<2048x128xf32> -> vector<2048x128xf32>
    %cst_3 = arith.constant 0.000000e+00 : f32
    %3 = vector.broadcast %cst_3 : f32 to vector<2048x128xf32>
    %4 = arith.maximumf %2, %3 : vector<2048x128xf32>
    %5 = vector.shape_cast %4 : vector<2048x128xf32> to vector<8x256x128xf32>
    %cst_4 = arith.constant dense<0.000000e+00> : vector<8x128xf32>
    %6 = vector.multi_reduction <add>, %5, %cst_4 [1] : vector<8x256x128xf32> to vector<8x128xf32>
    %cst_5 = arith.constant 2.560000e+02 : f32
    %7 = vector.broadcast %cst_5 : f32 to vector<8x128xf32>
    %8 = arith.divf %6, %7 : vector<8x128xf32>
    %c0_6 = arith.constant 0 : index
    %c0_7 = arith.constant 0 : index
    %9 = vector.load %arg2[%c0_6, %c0_7] : memref<8x32xbf16, #tpu.memory_space<vmem>>, vector<8x32xbf16>
    %c0_8 = arith.constant 0 : index
    %c0_9 = arith.constant 0 : index
    %10 = vector.load %arg4[%c0_8, %c0_9] : memref<32x128xbf16, #tpu.memory_space<vmem>>, vector<32x128xbf16>
    %cst_10 = arith.constant dense<0.000000e+00> : vector<8x128xf32>
    %11 = tpu.matmul %9, %10, %cst_10 {dimension_numbers = #tpu.dot_dimension_numbers<[1], [0], [0], [1], [0, 0, 1, 1], [], []>} : vector<8x32xbf16>, vector<32x128xbf16>, vector<8x128xf32> -> vector<8x128xf32>
    %12 = arith.truncf %8 : vector<8x128xf32> to vector<8x128xbf16>
    %c0_11 = arith.constant 0 : index
    %c0_12 = arith.constant 0 : index
    %13 = vector.load %arg5[%c0_11, %c0_12] : memref<128x128xbf16, #tpu.memory_space<vmem>>, vector<128x128xbf16>
    %cst_13 = arith.constant dense<0.000000e+00> : vector<8x128xf32>
    %14 = tpu.matmul %12, %13, %cst_13 {dimension_numbers = #tpu.dot_dimension_numbers<[1], [0], [0], [1], [0, 0, 1, 1], [], []>} : vector<8x128xbf16>, vector<128x128xbf16>, vector<8x128xf32> -> vector<8x128xf32>
    %15 = arith.addf %11, %14 : vector<8x128xf32>
    %c0_14 = arith.constant 0 : index
    %c0_15 = arith.constant 0 : index
    %16 = vector.load %arg6[%c0_14, %c0_15] : memref<1x128xf32, #tpu.memory_space<vmem>>, vector<1x128xf32>
    %17 = vector.broadcast %16 : vector<1x128xf32> to vector<8x128xf32>
    %18 = arith.addf %15, %17 : vector<8x128xf32>
    %cst_16 = arith.constant 0.000000e+00 : f32
    %19 = vector.broadcast %cst_16 : f32 to vector<8x128xf32>
    %20 = arith.maximumf %18, %19 : vector<8x128xf32>
    %21 = arith.truncf %20 : vector<8x128xf32> to vector<8x128xbf16>
    %c0_17 = arith.constant 0 : index
    %c0_18 = arith.constant 0 : index
    %22 = vector.load %arg7[%c0_17, %c0_18] : memref<128x128xbf16, #tpu.memory_space<vmem>>, vector<128x128xbf16>
    %cst_19 = arith.constant dense<0.000000e+00> : vector<8x128xf32>
    %23 = tpu.matmul %21, %22, %cst_19 {dimension_numbers = #tpu.dot_dimension_numbers<[1], [0], [0], [1], [0, 0, 1, 1], [], []>} : vector<8x128xbf16>, vector<128x128xbf16>, vector<8x128xf32> -> vector<8x128xf32>
    %c0_20 = arith.constant 0 : index
    %c0_21 = arith.constant 0 : index
    %24 = vector.load %arg8[%c0_20, %c0_21] : memref<1x128xf32, #tpu.memory_space<vmem>>, vector<1x128xf32>
    %25 = vector.broadcast %24 : vector<1x128xf32> to vector<8x128xf32>
    %26 = arith.addf %23, %25 : vector<8x128xf32>
    %cst_22 = arith.constant 0.000000e+00 : f32
    %27 = vector.broadcast %cst_22 : f32 to vector<8x128xf32>
    %28 = arith.maximumf %26, %27 : vector<8x128xf32>
    %29 = arith.truncf %28 : vector<8x128xf32> to vector<8x128xbf16>
    %c0_23 = arith.constant 0 : index
    %c0_24 = arith.constant 0 : index
    %30 = vector.load %arg9[%c0_23, %c0_24] : memref<128x128xbf16, #tpu.memory_space<vmem>>, vector<128x128xbf16>
    %cst_25 = arith.constant dense<0.000000e+00> : vector<8x128xf32>
    %31 = tpu.matmul %29, %30, %cst_25 {dimension_numbers = #tpu.dot_dimension_numbers<[1], [0], [0], [1], [0, 0, 1, 1], [], []>} : vector<8x128xbf16>, vector<128x128xbf16>, vector<8x128xf32> -> vector<8x128xf32>
    %c0_26 = arith.constant 0 : index
    %c0_27 = arith.constant 0 : index
    %32 = vector.load %arg10[%c0_26, %c0_27] : memref<1x128xf32, #tpu.memory_space<vmem>>, vector<1x128xf32>
    %33 = vector.broadcast %32 : vector<1x128xf32> to vector<8x128xf32>
    %34 = arith.addf %31, %33 : vector<8x128xf32>
    %c0_28 = arith.constant 0 : index
    %c0_29 = arith.constant 0 : index
    %35 = vector.load %arg11[%c0_28, %c0_29] : memref<8x128xf32, #tpu.memory_space<vmem>>, vector<8x128xf32>
    tpu.vector_store %arg11[%c0_28, %c0_29], %34 {strides = array<i32>} : memref<8x128xf32, #tpu.memory_space<vmem>>, vector<8x128xf32>,
    return
  }
  func.func @transform_0(%arg0: i32) -> (i32, i32) {
    %c0_i32 = arith.constant 0 : i32
    %c0_i32_0 = arith.constant 0 : i32
    return %arg0, %c0_i32 : i32, i32
  }
  func.func @transform_1(%arg0: i32) -> (i32, i32) {
    %c0_i32 = arith.constant 0 : i32
    %c0_i32_0 = arith.constant 0 : i32
    return %arg0, %c0_i32 : i32, i32
  }
  func.func @transform_2(%arg0: i32) -> (i32, i32) {
    %c0_i32 = arith.constant 0 : i32
    %c0_i32_0 = arith.constant 0 : i32
    %c0_i32_1 = arith.constant 0 : i32
    return %c0_i32, %c0_i32_0 : i32, i32
  }
  func.func @transform_3(%arg0: i32) -> (i32, i32) {
    %c0_i32 = arith.constant 0 : i32
    %c0_i32_0 = arith.constant 0 : i32
    %c0_i32_1 = arith.constant 0 : i32
    return %c0_i32, %c0_i32_0 : i32, i32
  }
  func.func @transform_4(%arg0: i32) -> (i32, i32) {
    %c0_i32 = arith.constant 0 : i32
    %c0_i32_0 = arith.constant 0 : i32
    %c0_i32_1 = arith.constant 0 : i32
    return %c0_i32, %c0_i32_0 : i32, i32
  }
  func.func @transform_5(%arg0: i32) -> (i32, i32) {
    %c0_i32 = arith.constant 0 : i32
    %c0_i32_0 = arith.constant 0 : i32
    %c0_i32_1 = arith.constant 0 : i32
    return %c0_i32, %c0_i32_0 : i32, i32
  }
  func.func @transform_6(%arg0: i32) -> (i32, i32) {
    %c0_i32 = arith.constant 0 : i32
    %c0_i32_0 = arith.constant 0 : i32
    %c0_i32_1 = arith.constant 0 : i32
    return %c0_i32, %c0_i32_0 : i32, i32
  }
  func.func @transform_7(%arg0: i32) -> (i32, i32) {
    %c0_i32 = arith.constant 0 : i32
    %c0_i32_0 = arith.constant 0 : i32
    %c0_i32_1 = arith.constant 0 : i32
    return %c0_i32, %c0_i32_0 : i32, i32
  }
  func.func @transform_8(%arg0: i32) -> (i32, i32) {
    %c0_i32 = arith.constant 0 : i32
    %c0_i32_0 = arith.constant 0 : i32
    %c0_i32_1 = arith.constant 0 : i32
    return %c0_i32, %c0_i32_0 : i32, i32
  }
  func.func @transform_9(%arg0: i32) -> (i32, i32) {
    %c0_i32 = arith.constant 0 : i32
    %c0_i32_0 = arith.constant 0 : i32
    %c0_i32_1 = arith.constant 0 : i32
    return %c0_i32, %c0_i32_0 : i32, i32
  }
  func.func @transform_10(%arg0: i32) -> (i32, i32) {
    %c0_i32 = arith.constant 0 : i32
    %c0_i32_0 = arith.constant 0 : i32
    return %arg0, %c0_i32 : i32, i32
  }
}

</mosaic_0001>

<bundles_post_ra>
// kernel: vqa_forward.1
= control target key start
LH: loop header
LB: loop body
LE: loop exit
PB: predicated region body
PF: predicated region fallthrough
CT: control target
= control target key end

     0   :  { %vm948_vm0 = vcmask 261120   ;;  %vm2996_vm1 = vcmask 1041409   ;;  %vm4333_vm2 = vmmov 0   ;;  %vm2998_vm3 = vcmask 1042434   ;;  %s5096_s2 = inlined_call_operand.vmem [shape: bf16[32,128], index: 2, kind: input, shape index: {}]   ;;  %s5097_s0 = inlined_call_operand.vmem [shape: bf16[2048,32], index: 0, kind: input, shape index: {}]   ;;  %s5098_s4 = inlined_call_operand.vmem [shape: bf16[128,128], index: 4, kind: input, shape index: {}]   ;;  %s5099_s3 = inlined_call_operand.vmem [shape: bf16[32,128], index: 3, kind: input, shape index: {}]   ;;  %s5100_s6 = inlined_call_operand.vmem [shape: bf16[128,128], index: 6, kind: input, shape index: {}]   ;;  %s5101_s1 = inlined_call_operand.vmem [shape: bf16[8,32], index: 1, kind: input, shape index: {}]   ;;  %s5102_s8 = inlined_call_operand.vmem [shape: bf16[128,128], index: 8, kind: input, shape index: {}]   ;;  %s5103_s5 = inlined_call_operand.vmem [shape: f32[1,128], index: 5, kind: input, shape index: {}]   ;;  %s5104_s7 = inlined_call_operand.vmem [shape: f32[1,128], index: 7, kind: input, shape index: {}]   ;;  %s5105_s9 = inlined_call_operand.vmem [shape: f32[1,128], index: 9, kind: input, shape index: {}]   ;;  %s5106_s10 = inlined_call_operand.vmem [shape: f32[8,128], index: 10, kind: output, shape index: {}]  }
   0x1   :  { %v4176_v0 = vld [vmem:[%s5096_s2] sm:$0xff]   ;;  %v4177_v1 = vld [vmem:[%s5096_s2 + $0x8] sm:$0xff]   ;;  %v4180_v4 = vld [vmem:[%s5097_s0 + $0x10] sm:$0xff]   ;;  %vm3000_vm4 = vcmask 1043459   ;;  %vm3002_vm5 = vcmask 1044484   ;;  %vm3004_vm6 = vcmask 1045509  }
   0x2   :  { %3842 = vmatprep.subr.bf16.mxu0 %v4176_v0  ;;  %v4178_v2 = vld [vmem:[%s5097_s0] sm:$0xff]   ;;  %4170 = vmatprep.subr.bf16.mxu1 %v4176_v0  ;;  %v4179_v3 = vld [vmem:[%s5097_s0 + $0x8] sm:$0xff]   ;;  %v4181_v5 = vld [vmem:[%s5097_s0 + $0x18] sm:$0xff]   ;;  %vm3006_vm7 = vcmask 1046534   ;;  %vm3008_vm8 = vcmask 1047559  }
   0x3   :  { %3843 = vmatpush3.bf16.msra.mxu0 %v4176_v0  ;;  %4172 = vmatpush3.bf16.msra.mxu1 %v4176_v0  ;;  %v4182_v6 = vld [vmem:[%s5097_s0 + $0x20] sm:$0xff]   ;;  %v4183_v7 = vld [vmem:[%s5097_s0 + $0x28] sm:$0xff]   ;;  %v4184_v8 = vld [vmem:[%s5097_s0 + $0x30] sm:$0xff]  }
   0x4   :  { %3844 = vmatprep.subr.bf16.mxu0 %v4177_v1  ;;  %3846 = vmatprep.mubr.msk.bf16.mxu0 %vm948_vm0, %v4178_v2  ;;  %v4202_v9 = vld [vmem:[%s5097_s0 + $0x250] sm:$0xff]   ;;  %v4203_v10 = vld [vmem:[%s5097_s0 + $0x258] sm:$0xff]   ;;  %v4206_v12 = vld [vmem:[%s5097_s0 + $0x260] sm:$0xff]  }
   0x5   :  { %4171 = vmatprep.subr.bf16.mxu1 %v4177_v1  ;;  %3994 = vmatprep.mubr.msk.bf16.mxu1 %vm948_vm0, %v4202_v9  ;;  %v4185_v11 = vld [vmem:[%s5097_s0 + $0x38] sm:$0xff]   ;;  %v4186_v13 = vld [vmem:[%s5097_s0 + $0x40] sm:$0xff]   ;;  %v4207_v14 = vld [vmem:[%s5097_s0 + $0x268] sm:$0xff]  }
   0x6   :  { %v4210_v15 = vld [vmem:[%s5097_s0 + $0x270] sm:$0xff]   ;;  %v4187_v16 = vld [vmem:[%s5097_s0 + $0x48] sm:$0xff]   ;;  %v4211_v18 = vld [vmem:[%s5097_s0 + $0x278] sm:$0xff]  }
   0x7   :  { %3845 = vmatpush3.bf16.msra.mxu0 %v4177_v1  ;;  %4173 = vmatpush3.bf16.msra.mxu1 %v4177_v1  ;;  %v4188_v17 = vld [vmem:[%s5097_s0 + $0x50] sm:$0xff]   ;;  %v4214_v19 = vld [vmem:[%s5097_s0 + $0x280] sm:$0xff]   ;;  %v4189_v20 = vld [vmem:[%s5097_s0 + $0x58] sm:$0xff]  }
   0x8   :  { %v4190_v21 = vld [vmem:[%s5097_s0 + $0x60] sm:$0xff]   ;;  %v4215_v22 = vld [vmem:[%s5097_s0 + $0x288] sm:$0xff]   ;;  %v4218_v23 = vld [vmem:[%s5097_s0 + $0x290] sm:$0xff]  }
   0x9   :  { %v4191_v24 = vld [vmem:[%s5097_s0 + $0x68] sm:$0xff]   ;;  %v4192_v25 = vld [vmem:[%s5097_s0 + $0x70] sm:$0xff]   ;;  %v4219_v26 = vld [vmem:[%s5097_s0 + $0x298] sm:$0xff]  }
   0xa   :  { %3847 = vmatmul.mubr.msk.bf16.vlgmr.msra.gmra.mrb[0].mxu0 %vm948_vm0, %v4179_v3  ;;  %3995 = vmatmul.mubr.msk.bf16.vlgmr.msra.gmra.mrb[0].mxu1 %vm948_vm0, %v4203_v10  ;;  %v4222_v27 = vld [vmem:[%s5097_s0 + $0x2a0] sm:$0xff]   ;;  %v4193_v28 = vld [vmem:[%s5097_s0 + $0x78] sm:$0xff]   ;;  %v4223_v30 = vld [vmem:[%s5097_s0 + $0x2a8] sm:$0xff]  }
   0xb   :  { %3850 = vmatprep.mubr.msk.bf16.mxu0 %vm948_vm0, %v4180_v4  ;;  %3998 = vmatprep.mubr.msk.bf16.mxu1 %vm948_vm0, %v4206_v12  ;;  %v4194_v29 = vld [vmem:[%s5097_s0 + $0x80] sm:$0xff]   ;;  %v4226_v31 = vld [vmem:[%s5097_s0 + $0x2b0] sm:$0xff]   ;;  %v4195_v32 = vld [vmem:[%s5097_s0 + $0x88] sm:$0xff]  }
   0xc   :  { %v4196_v33 = vld [vmem:[%s5097_s0 + $0x90] sm:$0xff]   ;;  %v4227_v34 = vld [vmem:[%s5097_s0 + $0x2b8] sm:$0xff]   ;;  %v4230_v35 = vld [vmem:[%s5097_s0 + $0x2c0] sm:$0xff]  }
   0xd   :  { %v4197_v36 = vld [vmem:[%s5097_s0 + $0x98] sm:$0xff]   ;;  %v4198_v37 = vld [vmem:[%s5097_s0 + $0xa0] sm:$0xff]   ;;  %v4231_v38 = vld [vmem:[%s5097_s0 + $0x2c8] sm:$0xff]  }
   0xe   :  { %v4234_v39 = vld [vmem:[%s5097_s0 + $0x2d0] sm:$0xff]   ;;  %v4199_v40 = vld [vmem:[%s5097_s0 + $0xa8] sm:$0xff]   ;;  %v4235_v42 = vld [vmem:[%s5097_s0 + $0x2d8] sm:$0xff]  }
   0xf   :  { %v4200_v41 = vld [vmem:[%s5097_s0 + $0xb0] sm:$0xff]   ;;  %v4238_v43 = vld [vmem:[%s5097_s0 + $0x2e0] sm:$0xff]   ;;  %v4201_v44 = vld [vmem:[%s5097_s0 + $0xb8] sm:$0xff]  }
  0x10   :  { %v4204_v45 = vld [vmem:[%s5097_s0 + $0xc0] sm:$0xff]   ;;  %v4239_v46 = vld [vmem:[%s5097_s0 + $0x2e8] sm:$0xff]   ;;  %v4242_v47 = vld [vmem:[%s5097_s0 + $0x2f0] sm:$0xff]  }
  0x11   :  { %v4205_v48 = vld [vmem:[%s5097_s0 + $0xc8] sm:$0xff]   ;;  %v4208_v49 = vld [vmem:[%s5097_s0 + $0xd0] sm:$0xff]   ;;  %v4243_v50 = vld [vmem:[%s5097_s0 + $0x2f8] sm:$0xff]  }
  0x12   :  { %3851 = vmatmul.mubr.msk.bf16.gmra.mrb[4].mxu0 %vm948_vm0, %v4181_v5  ;;  %3999 = vmatmul.mubr.msk.bf16.gmra.mrb[4].mxu1 %vm948_vm0, %v4207_v14  ;;  %v4246_v51 = vld [vmem:[%s5097_s0 + $0x300] sm:$0xff]   ;;  %v4209_v52 = vld [vmem:[%s5097_s0 + $0xd8] sm:$0xff]   ;;  %v4247_v54 = vld [vmem:[%s5097_s0 + $0x308] sm:$0xff]  }
  0x13   :  { %3854 = vmatprep.mubr.msk.bf16.mxu0 %vm948_vm0, %v4182_v6  ;;  %4002 = vmatprep.mubr.msk.bf16.mxu1 %vm948_vm0, %v4210_v15  ;;  %v4212_v53 = vld [vmem:[%s5097_s0 + $0xe0] sm:$0xff]   ;;  %v4250_v55 = vld [vmem:[%s5097_s0 + $0x310] sm:$0xff]   ;;  %v4213_v56 = vld [vmem:[%s5097_s0 + $0xe8] sm:$0xff]  }
  0x14   :  { %v4216_v57 = vld [vmem:[%s5097_s0 + $0xf0] sm:$0xff]   ;;  %v4251_v58 = vld [vmem:[%s5097_s0 + $0x318] sm:$0xff]   ;;  %v4254_v59 = vld [vmem:[%s5097_s0 + $0x320] sm:$0xff]  }
  0x15   :  { %v4217_v60 = vld [vmem:[%s5097_s0 + $0xf8] sm:$0xff]   ;;  %v4220_v61 = vld [vmem:[%s5097_s0 + $0x100] sm:$0xff]   ;;  %v4255_v62 = vld [vmem:[%s5097_s0 + $0x328] sm:$0xff]  }
  0x16   :  { %v4258_v63 = vld [vmem:[%s5097_s0 + $0x330] sm:$0xff]   ;;  %v4221_v0 = vld [vmem:[%s5097_s0 + $0x108] sm:$0xff]   ;;  %v4259_v2 = vld [vmem:[%s5097_s0 + $0x338] sm:$0xff]  }
  0x17   :  { %v4224_v1 = vld [vmem:[%s5097_s0 + $0x110] sm:$0xff]   ;;  %v4262_v3 = vld [vmem:[%s5097_s0 + $0x340] sm:$0xff]   ;;  %v4225_v4 = vld [vmem:[%s5097_s0 + $0x118] sm:$0xff]  }
  0x18   :  { %v4228_v5 = vld [vmem:[%s5097_s0 + $0x120] sm:$0xff]   ;;  %v4263_v6 = vld [vmem:[%s5097_s0 + $0x348] sm:$0xff]   ;;  %v4232_v9 = vld [vmem:[%s5097_s0 + $0x130] sm:$0xff]  }
  0x19   :  { %v4267_v10 = vld [vmem:[%s5097_s0 + $0x358] sm:$0xff]   ;;  %v4271_v14 = vld [vmem:[%s5097_s0 + $0x368] sm:$0xff]   ;;  %v4274_v15 = vld [vmem:[%s5097_s0 + $0x370] sm:$0xff]  }
  0x1a   :  { %3855 = vmatmul.mubr.msk.bf16.gmra.mrb[8].mxu0 %vm948_vm0, %v4183_v7  ;;  %4003 = vmatmul.mubr.msk.bf16.gmra.mrb[8].mxu1 %vm948_vm0, %v4211_v18  ;;  %v4266_v7 = vld [vmem:[%s5097_s0 + $0x350] sm:$0xff]   ;;  %v4233_v12 = vld [vmem:[%s5097_s0 + $0x138] sm:$0xff]  }
  0x1b   :  { %3858 = vmatprep.mubr.msk.bf16.mxu0 %vm948_vm0, %v4184_v8  ;;  %4006 = vmatprep.mubr.msk.bf16.mxu1 %vm948_vm0, %v4214_v19  ;;  %v4229_v8 = vld [vmem:[%s5097_s0 + $0x128] sm:$0xff]   ;;  %v4275_v18 = vld [vmem:[%s5097_s0 + $0x378] sm:$0xff]   ;;  %v4278_v19 = vld [vmem:[%s5097_s0 + $0x380] sm:$0xff]  }
  0x22   :  { %3859 = vmatmul.mubr.msk.bf16.gmra.mrb[12].mxu0 %vm948_vm0, %v4185_v11  ;;  %4007 = vmatmul.mubr.msk.bf16.gmra.mrb[12].mxu1 %vm948_vm0, %v4215_v22  ;;  %v4270_v11 = vld [vmem:[%s5097_s0 + $0x360] sm:$0xff]   ;;  %v4279_v22 = vld [vmem:[%s5097_s0 + $0x388] sm:$0xff]  }
  0x23   :  { %3862 = vmatprep.mubr.msk.bf16.mxu0 %vm948_vm0, %v4186_v13  ;;  %4010 = vmatprep.mubr.msk.bf16.mxu1 %vm948_vm0, %v4218_v23  ;;  %v4236_v13 = vld [vmem:[%s5097_s0 + $0x140] sm:$0xff]   ;;  %v4282_v23 = vld [vmem:[%s5097_s0 + $0x390] sm:$0xff]  }
  0x2a   :  { %3863 = vmatmul.mubr.msk.bf16.gmra.mrb[16].mxu0 %vm948_vm0, %v4187_v16  ;;  %4011 = vmatmul.mubr.msk.bf16.gmra.mrb[16].mxu1 %vm948_vm0, %v4219_v26  ;;  %v4237_v16 = vld [vmem:[%s5097_s0 + $0x148] sm:$0xff]   ;;  %v4283_v26 = vld [vmem:[%s5097_s0 + $0x398] sm:$0xff]  }
  0x2b   :  { %3866 = vmatprep.mubr.msk.bf16.mxu0 %vm948_vm0, %v4188_v17  ;;  %4014 = vmatprep.mubr.msk.bf16.mxu1 %vm948_vm0, %v4222_v27  ;;  %v4240_v17 = vld [vmem:[%s5097_s0 + $0x150] sm:$0xff]   ;;  %v4286_v27 = vld [vmem:[%s5097_s0 + $0x3a0] sm:$0xff]  }
  0x32   :  { %3867 = vmatmul.mubr.msk.bf16.gmra.mrb[20].mxu0 %vm948_vm0, %v4189_v20  ;;  %4015 = vmatmul.mubr.msk.bf16.gmra.mrb[20].mxu1 %vm948_vm0, %v4223_v30  ;;  %v4241_v20 = vld [vmem:[%s5097_s0 + $0x158] sm:$0xff]   ;;  %v4287_v30 = vld [vmem:[%s5097_s0 + $0x3a8] sm:$0xff]  }
  0x33   :  { %3870 = vmatprep.mubr.msk.bf16.mxu0 %vm948_vm0, %v4190_v21  ;;  %4018 = vmatprep.mubr.msk.bf16.mxu1 %vm948_vm0, %v4226_v31  ;;  %v4244_v21 = vld [vmem:[%s5097_s0 + $0x160] sm:$0xff]   ;;  %v4290_v31 = vld [vmem:[%s5097_s0 + $0x3b0] sm:$0xff]  }
  0x3a   :  { %3871 = vmatmul.mubr.msk.bf16.gmra.mrb[24].mxu0 %vm948_vm0, %v4191_v24  ;;  %4019 = vmatmul.mubr.msk.bf16.gmra.mrb[24].mxu1 %vm948_vm0, %v4227_v34  ;;  %v4245_v24 = vld [vmem:[%s5097_s0 + $0x168] sm:$0xff]   ;;  %v4291_v34 = vld [vmem:[%s5097_s0 + $0x3b8] sm:$0xff]  }
  0x3b   :  { %3874 = vmatprep.mubr.msk.bf16.mxu0 %vm948_vm0, %v4192_v25  ;;  %4022 = vmatprep.mubr.msk.bf16.mxu1 %vm948_vm0, %v4230_v35  ;;  %v4248_v25 = vld [vmem:[%s5097_s0 + $0x170] sm:$0xff]   ;;  %v4294_v35 = vld [vmem:[%s5097_s0 + $0x3c0] sm:$0xff]  }
  0x42   :  { %3875 = vmatmul.mubr.msk.bf16.gmra.mrb[28].mxu0 %vm948_vm0, %v4193_v28  ;;  %4023 = vmatmul.mubr.msk.bf16.gmra.mrb[28].mxu1 %vm948_vm0, %v4231_v38  ;;  %v4249_v28 = vld [vmem:[%s5097_s0 + $0x178] sm:$0xff]   ;;  %v4295_v38 = vld [vmem:[%s5097_s0 + $0x3c8] sm:$0xff]  }
  0x43   :  { %3878 = vmatprep.mubr.msk.bf16.mxu0 %vm948_vm0, %v4194_v29  ;;  %4026 = vmatprep.mubr.msk.bf16.mxu1 %vm948_vm0, %v4234_v39  ;;  %v4252_v29 = vld [vmem:[%s5097_s0 + $0x180] sm:$0xff]   ;;  %v4298_v39 = vld [vmem:[%s5097_s0 + $0x3d0] sm:$0xff]  }
  0x4a   :  { %3879 = vmatmul.mubr.msk.bf16.gmra.mrb[32].mxu0 %vm948_vm0, %v4195_v32  ;;  %4027 = vmatmul.mubr.msk.bf16.gmra.mrb[32].mxu1 %vm948_vm0, %v4235_v42  ;;  %v4253_v32 = vld [vmem:[%s5097_s0 + $0x188] sm:$0xff]   ;;  %v4299_v42 = vld [vmem:[%s5097_s0 + $0x3d8] sm:$0xff]  }
  0x4b   :  { %3882 = vmatprep.mubr.msk.bf16.mxu0 %vm948_vm0, %v4196_v33  ;;  %4030 = vmatprep.mubr.msk.bf16.mxu1 %vm948_vm0, %v4238_v43  ;;  %v4256_v33 = vld [vmem:[%s5097_s0 + $0x190] sm:$0xff]   ;;  %v4302_v43 = vld [vmem:[%s5097_s0 + $0x3e0] sm:$0xff]  }
  0x52   :  { %3883 = vmatmul.mubr.msk.bf16.gmra.mrb[36].mxu0 %vm948_vm0, %v4197_v36  ;;  %4031 = vmatmul.mubr.msk.bf16.gmra.mrb[36].mxu1 %vm948_vm0, %v4239_v46  ;;  %v4257_v36 = vld [vmem:[%s5097_s0 + $0x198] sm:$0xff]  }
  0x53   :  { %3886 = vmatprep.mubr.msk.bf16.mxu0 %vm948_vm0, %v4198_v37  ;;  %4034 = vmatprep.mubr.msk.bf16.mxu1 %vm948_vm0, %v4242_v47  ;;  %v4260_v37 = vld [vmem:[%s5097_s0 + $0x1a0] sm:$0xff]   ;;  %v4265_v46 = vld [vmem:[%s5097_s0 + $0x1b8] sm:$0xff]  }
  0x5a   :  { %3887 = vmatmul.mubr.msk.bf16.gmra.mrb[40].mxu0 %vm948_vm0, %v4199_v40  ;;  %4035 = vmatmul.mubr.msk.bf16.gmra.mrb[40].mxu1 %vm948_vm0, %v4243_v50  ;;  %v4261_v40 = vld [vmem:[%s5097_s0 + $0x1a8] sm:$0xff]  }
  0x5b   :  { %3890 = vmatprep.mubr.msk.bf16.mxu0 %vm948_vm0, %v4200_v41  ;;  %4038 = vmatprep.mubr.msk.bf16.mxu1 %vm948_vm0, %v4246_v51  ;;  %v4264_v41 = vld [vmem:[%s5097_s0 + $0x1b0] sm:$0xff]  }
  0x62   :  { %3891 = vmatmul.mubr.msk.bf16.gmra.mrb[44].mxu0 %vm948_vm0, %v4201_v44  ;;  %4039 = vmatmul.mubr.msk.bf16.gmra.mrb[44].mxu1 %vm948_vm0, %v4247_v54 }
  0x63   :  { %3894 = vmatprep.mubr.msk.bf16.mxu0 %vm948_vm0, %v4204_v45  ;;  %4042 = vmatprep.mubr.msk.bf16.mxu1 %vm948_vm0, %v4250_v55 }
  0x6a   :  { %3895 = vmatmul.mubr.msk.bf16.gmra.mrb[48].mxu0 %vm948_vm0, %v4205_v48  ;;  %4043 = vmatmul.mubr.msk.bf16.gmra.mrb[48].mxu1 %vm948_vm0, %v4251_v58  ;;  %v4268_v48 = vld [vmem:[%s5097_s0 + $0x1c0] sm:$0xff]  }
  0x6b   :  { %3898 = vmatprep.mubr.msk.bf16.mxu0 %vm948_vm0, %v4208_v49  ;;  %4046 = vmatprep.mubr.msk.bf16.mxu1 %vm948_vm0, %v4254_v59 }
  0x72   :  { %3899 = vmatmul.mubr.msk.bf16.gmra.mrb[52].mxu0 %vm948_vm0, %v4209_v52  ;;  %4047 = vmatmul.mubr.msk.bf16.gmra.mrb[52].mxu1 %vm948_vm0, %v4255_v62  ;;  %v4303_v52 = vld [vmem:[%s5097_s0 + $0x3e8] sm:$0xff]  }
  0x73   :  { %3902 = vmatprep.mubr.msk.bf16.mxu0 %vm948_vm0, %v4212_v53  ;;  %4050 = vmatprep.mubr.msk.bf16.mxu1 %vm948_vm0, %v4258_v63  ;;  %v4304_v53 = vld [vmem:[%s5097_s0 + $0x3f0] sm:$0xff]  }
  0x7a   :  { %3903 = vmatmul.mubr.msk.bf16.gmra.mrb[56].mxu0 %vm948_vm0, %v4213_v56  ;;  %4051 = vmatmul.mubr.msk.bf16.gmra.mrb[56].mxu1 %vm948_vm0, %v4259_v2 }
  0x7b   :  { %3906 = vmatprep.mubr.msk.bf16.mxu0 %vm948_vm0, %v4216_v57  ;;  %4054 = vmatprep.mubr.msk.bf16.mxu1 %vm948_vm0, %v4262_v3 }
  0x82   :  { %3907 = vmatmul.mubr.msk.bf16.gmra.mrb[60].mxu0 %vm948_vm0, %v4217_v60  ;;  %4055 = vmatmul.mubr.msk.bf16.gmra.mrb[60].mxu1 %vm948_vm0, %v4263_v6  ;;  %v4269_v60 = vld [vmem:[%s5097_s0 + $0x1c8] sm:$0xff]  }
  0x83   :  { %3910 = vmatprep.mubr.msk.bf16.mxu0 %vm948_vm0, %v4220_v61  ;;  %4058 = vmatprep.mubr.msk.bf16.mxu1 %vm948_vm0, %v4266_v7 }
  0x8a   :  { %3911 = vmatmul.mubr.msk.bf16.gmra.mrb[64].mxu0 %vm948_vm0, %v4221_v0  ;;  %4059 = vmatmul.mubr.msk.bf16.gmra.mrb[64].mxu1 %vm948_vm0, %v4267_v10  ;;  %v4272_v0 = vld [vmem:[%s5097_s0 + $0x1d0] sm:$0xff]  }
  0x8b   :  { %3914 = vmatprep.mubr.msk.bf16.mxu0 %vm948_vm0, %v4224_v1  ;;  %4062 = vmatprep.mubr.msk.bf16.mxu1 %vm948_vm0, %v4270_v11  ;;  %v4273_v11 = vld [vmem:[%s5097_s0 + $0x1d8] sm:$0xff]  }
  0x92   :  { %3915 = vmatmul.mubr.msk.bf16.gmra.mrb[68].mxu0 %vm948_vm0, %v4225_v4  ;;  %4063 = vmatmul.mubr.msk.bf16.gmra.mrb[68].mxu1 %vm948_vm0, %v4271_v14  ;;  %v4305_v4 = vld [vmem:[%s5097_s0 + $0x3f8] sm:$0xff]  }
  0x93   :  { %3918 = vmatprep.mubr.msk.bf16.mxu0 %vm948_vm0, %v4228_v5  ;;  %4066 = vmatprep.mubr.msk.bf16.mxu1 %vm948_vm0, %v4274_v15  ;;  %v4276_v15 = vld [vmem:[%s5097_s0 + $0x1e0] sm:$0xff]  }
  0x9a   :  { %3919 = vmatmul.mubr.msk.bf16.gmra.mrb[72].mxu0 %vm948_vm0, %v4229_v8  ;;  %4067 = vmatmul.mubr.msk.bf16.gmra.mrb[72].mxu1 %vm948_vm0, %v4275_v18 }
  0x9b   :  { %3922 = vmatprep.mubr.msk.bf16.mxu0 %vm948_vm0, %v4232_v9  ;;  %4070 = vmatprep.mubr.msk.bf16.mxu1 %vm948_vm0, %v4278_v19 }
  0xa2   :  { %3923 = vmatmul.mubr.msk.bf16.gmra.mrb[76].mxu0 %vm948_vm0, %v4233_v12  ;;  %4071 = vmatmul.mubr.msk.bf16.gmra.mrb[76].mxu1 %vm948_vm0, %v4279_v22 }
  0xa3   :  { %3926 = vmatprep.mubr.msk.bf16.mxu0 %vm948_vm0, %v4236_v13  ;;  %4074 = vmatprep.mubr.msk.bf16.mxu1 %vm948_vm0, %v4282_v23 }
  0xaa   :  { %3927 = vmatmul.mubr.msk.bf16.gmra.mrb[80].mxu0 %vm948_vm0, %v4237_v16  ;;  %4075 = vmatmul.mubr.msk.bf16.gmra.mrb[80].mxu1 %vm948_vm0, %v4283_v26  ;;  %v4332_v26 = vmov 0.0  }
  0xab   :  { %3930 = vmatprep.mubr.msk.bf16.mxu0 %vm948_vm0, %v4240_v17  ;;  %4078 = vmatprep.mubr.msk.bf16.mxu1 %vm948_vm0, %v4286_v27  ;;  %v4306_v27 = vld [vmem:[%s5098_s4] sm:$0xff]  }
  0xac   :  { %4102 = vmatprep.subr.bf16.mxu1 %v4332_v26 }
  0xad   :  { %4103 = vmatpush3.bf16.msra.mxu1 %v4306_v27 }
  0xae   :  { %4104 = vmatprep.subr.bf16.mxu1 %v4332_v26 }
  0xb2   :  { %3931 = vmatmul.mubr.msk.bf16.gmra.mrb[84].mxu0 %vm948_vm0, %v4241_v20  ;;  %4079 = vmatmul.mubr.msk.bf16.gmra.mrb[84].mxu1 %vm948_vm0, %v4287_v30 }
  0xb3   :  { %3934 = vmatprep.mubr.msk.bf16.mxu0 %vm948_vm0, %v4244_v21  ;;  %4082 = vmatprep.mubr.msk.bf16.mxu1 %vm948_vm0, %v4290_v31 }
  0xba   :  { %3935 = vmatmul.mubr.msk.bf16.gmra.mrb[88].mxu0 %vm948_vm0, %v4245_v24  ;;  %4083 = vmatmul.mubr.msk.bf16.gmra.mrb[88].mxu1 %vm948_vm0, %v4291_v34 }
  0xbb   :  { %3938 = vmatprep.mubr.msk.bf16.mxu0 %vm948_vm0, %v4248_v25  ;;  %4086 = vmatprep.mubr.msk.bf16.mxu1 %vm948_vm0, %v4294_v35  ;;  %v4277_v25 = vld [vmem:[%s5097_s0 + $0x1e8] sm:$0xff]  }
  0xc2   :  { %3939 = vmatmul.mubr.msk.bf16.gmra.mrb[92].mxu0 %vm948_vm0, %v4249_v28  ;;  %4087 = vmatmul.mubr.msk.bf16.gmra.mrb[92].mxu1 %vm948_vm0, %v4295_v38 }
  0xc3   :  { %3942 = vmatprep.mubr.msk.bf16.mxu0 %vm948_vm0, %v4252_v29  ;;  %4090 = vmatprep.mubr.msk.bf16.mxu1 %vm948_vm0, %v4298_v39 }
  0xca   :  { %3943 = vmatmul.mubr.msk.bf16.gmra.mrb[96].mxu0 %vm948_vm0, %v4253_v32  ;;  %4091 = vmatmul.mubr.msk.bf16.gmra.mrb[96].mxu1 %vm948_vm0, %v4299_v42  ;;  %v4280_v32 = vld [vmem:[%s5097_s0 + $0x1f0] sm:$0xff]  }
  0xcb   :  { %3946 = vmatprep.mubr.msk.bf16.mxu0 %vm948_vm0, %v4256_v33  ;;  %4094 = vmatprep.mubr.msk.bf16.mxu1 %vm948_vm0, %v4302_v43 }
  0xd2   :  { %3947 = vmatmul.mubr.msk.bf16.gmra.mrb[100].mxu0 %vm948_vm0, %v4257_v36  ;;  %4095 = vmatmul.mubr.msk.bf16.gmra.mrb[100].mxu1 %vm948_vm0, %v4303_v52 }
  0xd3   :  { %3950 = vmatprep.mubr.msk.bf16.mxu0 %vm948_vm0, %v4260_v37  ;;  %4098 = vmatprep.mubr.msk.bf16.mxu1 %vm948_vm0, %v4304_v53 }
  0xda   :  { %3951 = vmatmul.mubr.msk.bf16.gmra.mrb[104].mxu0 %vm948_vm0, %v4261_v40  ;;  %4099 = vmatmul.mubr.msk.bf16.gmra.mrb[104].mxu1 %vm948_vm0, %v4305_v4  ;;  %v4285_v4 = vld [vmem:[%s5097_s0 + $0x208] sm:$0xff]  }
  0xdb   :  { %3954 = vmatprep.mubr.msk.bf16.mxu0 %vm948_vm0, %v4264_v41  ;;  %4118 = vmatprep.mubr.msk.bf16.mxu1 %vm4333_vm2, %v4332_v26 }
  0xdd   :  { %v3848_v44 = vpop.f32.mrb[0].mxu0  ;;  %v4853_v17 = vpop.f32.mrb[0].mxu1 }
  0xde   :  { %v1367_v45 = vpop.f32.mrb[1].mxu0  ;;  %v2392_v54 = vmax.f32 %v3848_v44, 0.0  ;;  %v4855_v20 = vpop.f32.mrb[1].mxu1 }
  0xdf   :  { %v3849_v47 = vpop.f32.mrb[2].mxu0  ;;  %v2390_v50 = vmax.f32 %v1367_v45, 0.0  ;;  %v4858_v21 = vpop.f32.mrb[2].mxu1 }
  0xe0   :  { %v1370_v49 = vpop.f32.mrb[3].mxu0  ;;  %v2393_v56 = vmax.f32 %v3849_v47, 0.0  ;;  %v4861_v24 = vpop.f32.mrb[3].mxu1 }
  0xe1   :  { %v2391_v51 = vmax.f32 %v1370_v49, 0.0 }
  0xe2   :  { %3955 = vmatmul.mubr.msk.bf16.gmra.mrb[108].mxu0 %vm948_vm0, %v4265_v46 }
  0xe3   :  { %v2646_v55 = vadd.f32 %v2391_v51, %v2390_v50  ;;  %3958 = vmatprep.mubr.msk.bf16.mxu0 %vm948_vm0, %v4268_v48  ;;  %v4307_v48 = vld [vmem:[%s5098_s4 + $0x8] sm:$0xff]   ;;  %v4281_v50 = vld [vmem:[%s5097_s0 + $0x1f8] sm:$0xff]  }
  0xe4   :  { %4105 = vmatpush3.bf16.msra.mxu1 %v4307_v48 }
  0xe5   :  { %v2647_v57 = vadd.f32 %v2646_v55, %v2392_v54  ;;  %v3852_v58 = vpop.f32.mrb[4].mxu0  ;;  %v4874_v37 = vpop.f32.mrb[4].mxu1  ;;  %v4284_v54 = vld [vmem:[%s5097_s0 + $0x200] sm:$0xff]   ;;  %4106 = vmatprep.subr.bf16.mxu1 %v4332_v26 }
  0xe6   :  { %v1383_v59 = vpop.f32.mrb[5].mxu0  ;;  %v2396_v5 = vmax.f32 %v3852_v58, 0.0  ;;  %v4876_v40 = vpop.f32.mrb[5].mxu1 }
  0xe7   :  { %v2394_v61 = vmax.f32 %v1383_v59, 0.0  ;;  %v2648_v62 = vadd.f32 %v2647_v57, %v2393_v56  ;;  %v3853_v63 = vpop.f32.mrb[6].mxu0  ;;  %v4879_v41 = vpop.f32.mrb[6].mxu1 }
  0xe8   :  { %v1386_v1 = vpop.f32.mrb[7].mxu0  ;;  %v2397_v7 = vmax.f32 %v3853_v63, 0.0  ;;  %v4882_v44 = vpop.f32.mrb[7].mxu1 }
  0xe9   :  { %v2649_v2 = vadd.f32 %v2648_v62, %v2394_v61  ;;  %v2395_v3 = vmax.f32 %v1386_v1, 0.0 }
  0xea   :  { %3959 = vmatmul.mubr.msk.bf16.gmra.mrb[112].mxu0 %vm948_vm0, %v4269_v60 }
  0xeb   :  { %v2650_v6 = vadd.f32 %v2649_v2, %v2395_v3  ;;  %3962 = vmatprep.mubr.msk.bf16.mxu0 %vm948_vm0, %v4272_v0 }
  0xed   :  { %v2651_v8 = vadd.f32 %v2650_v6, %v2396_v5  ;;  %v3856_v9 = vpop.f32.mrb[8].mxu0  ;;  %v4893_v56 = vpop.f32.mrb[8].mxu1 }
  0xee   :  { %v1399_v10 = vpop.f32.mrb[9].mxu0  ;;  %v2400_v22 = vmax.f32 %v3856_v9, 0.0  ;;  %v4896_v59 = vpop.f32.mrb[9].mxu1 }
  0xef   :  { %v2398_v12 = vmax.f32 %v1399_v10, 0.0  ;;  %v2652_v13 = vadd.f32 %v2651_v8, %v2397_v7  ;;  %v3857_v14 = vpop.f32.mrb[10].mxu0  ;;  %v4899_v60 = vpop.f32.mrb[10].mxu1  ;;  %v4288_v8 = vld [vmem:[%s5097_s0 + $0x210] sm:$0xff]  }
  0xf0   :  { %v1402_v16 = vpop.f32.mrb[11].mxu0  ;;  %v2401_v28 = vmax.f32 %v3857_v14, 0.0  ;;  %v4902_v63 = vpop.f32.mrb[11].mxu1 }
  0xf1   :  { %v2653_v18 = vadd.f32 %v2652_v13, %v2398_v12  ;;  %v2399_v19 = vmax.f32 %v1402_v16, 0.0 }
  0xf2   :  { %3963 = vmatmul.mubr.msk.bf16.gmra.mrb[116].mxu0 %vm948_vm0, %v4273_v11 }
  0xf3   :  { %v2654_v23 = vadd.f32 %v2653_v18, %v2399_v19  ;;  %3966 = vmatprep.mubr.msk.bf16.mxu0 %vm948_vm0, %v4276_v15 }
  0xf5   :  { %v2655_v29 = vadd.f32 %v2654_v23, %v2400_v22  ;;  %v3860_v30 = vpop.f32.mrb[12].mxu0  ;;  %v4008_v10 = vpop.f32.mrb[12].mxu1 }
  0xf6   :  { %v1415_v31 = vpop.f32.mrb[13].mxu0  ;;  %v2404_v42 = vmax.f32 %v3860_v30, 0.0  ;;  %v2007_v13 = vpop.f32.mrb[13].mxu1  ;;  %v2552_v22 = vmax.f32 %v4008_v10, 0.0  ;;  %v4289_v30 = vld [vmem:[%s5097_s0 + $0x218] sm:$0xff]  }
  0xf7   :  { %v2402_v33 = vmax.f32 %v1415_v31, 0.0  ;;  %v2656_v34 = vadd.f32 %v2655_v29, %v2401_v28  ;;  %v3861_v35 = vpop.f32.mrb[14].mxu0  ;;  %v2550_v14 = vmax.f32 %v2007_v13, 0.0  ;;  %v4009_v15 = vpop.f32.mrb[14].mxu1  ;;  %v4308_v13 = vld [vmem:[%s5098_s4 + $0x10] sm:$0xff]  }
  0xf8   :  { %v1418_v36 = vpop.f32.mrb[15].mxu0  ;;  %v2405_v45 = vmax.f32 %v3861_v35, 0.0  ;;  %v2010_v19 = vpop.f32.mrb[15].mxu1  ;;  %v2553_v31 = vmax.f32 %v4009_v15, 0.0  ;;  %4107 = vmatpush3.bf16.msra.mxu1 %v4308_v13 }
  0xf9   :  { %v2657_v38 = vadd.f32 %v2656_v34, %v2402_v33  ;;  %v2403_v39 = vmax.f32 %v1418_v36, 0.0  ;;  %v2551_v23 = vmax.f32 %v2010_v19, 0.0  ;;  %v4292_v36 = vld [vmem:[%s5097_s0 + $0x220] sm:$0xff]   ;;  %4108 = vmatprep.subr.bf16.mxu1 %v4332_v26 }
  0xfa   :  { %3967 = vmatmul.mubr.msk.bf16.gmra.mrb[120].mxu0 %vm948_vm0, %v4277_v25 }
  0xfb   :  { %v2658_v43 = vadd.f32 %v2657_v38, %v2403_v39  ;;  %3970 = vmatprep.mubr.msk.bf16.mxu0 %vm948_vm0, %v4280_v32  ;;  %v2831_v32 = vadd.f32 %v2551_v23, %v2550_v14 }
  0xfd   :  { %v2659_v46 = vadd.f32 %v2658_v43, %v2404_v42  ;;  %v3864_v47 = vpop.f32.mrb[16].mxu0  ;;  %v2832_v39 = vadd.f32 %v2831_v32, %v2552_v22  ;;  %v4012_v42 = vpop.f32.mrb[16].mxu1  ;;  %v4297_v32 = vld [vmem:[%s5097_s0 + $0x238] sm:$0xff]  }
  0xfe   :  { %v1431_v49 = vpop.f32.mrb[17].mxu0  ;;  %v2408_v61 = vmax.f32 %v3864_v47, 0.0 }
  0xff   :  { %v2406_v51 = vmax.f32 %v1431_v49, 0.0  ;;  %v2660_v52 = vadd.f32 %v2659_v46, %v2405_v45  ;;  %v3865_v53 = vpop.f32.mrb[18].mxu0  ;;  %v2023_v46 = vpop.f32.mrb[17].mxu1  ;;  %v2833_v48 = vadd.f32 %v2832_v39, %v2553_v31 }
 0x100   :  { %v1434_v55 = vpop.f32.mrb[19].mxu0  ;;  %v2409_v0 = vmax.f32 %v3865_v53, 0.0  ;;  %v2554_v47 = vmax.f32 %v2023_v46, 0.0  ;;  %v4013_v49 = vpop.f32.mrb[18].mxu1  ;;  %v2556_v53 = vmax.f32 %v4012_v42, 0.0 }
 0x101   :  { %v2661_v57 = vadd.f32 %v2660_v52, %v2406_v51  ;;  %v2407_v58 = vmax.f32 %v1434_v55, 0.0  ;;  %v2026_v52 = vpop.f32.mrb[19].mxu1 }
 0x102   :  { %3971 = vmatmul.mubr.msk.bf16.gmra.mrb[124].mxu0 %vm948_vm0, %v4281_v50  ;;  %v2555_v55 = vmax.f32 %v2026_v52, 0.0 }
 0x103   :  { %v2662_v62 = vadd.f32 %v2661_v57, %v2407_v58  ;;  %3974 = vmatprep.mubr.msk.bf16.mxu0 %vm948_vm0, %v4284_v54  ;;  %v2834_v54 = vadd.f32 %v2833_v48, %v2554_v47 }
 0x105   :  { %v2663_v1 = vadd.f32 %v2662_v62, %v2408_v61  ;;  %v3868_v2 = vpop.f32.mrb[20].mxu0 }
 0x106   :  { %v1447_v3 = vpop.f32.mrb[21].mxu0  ;;  %v2412_v16 = vmax.f32 %v3868_v2, 0.0  ;;  %v2835_v2 = vadd.f32 %v2834_v54, %v2555_v55 }
 0x107   :  { %v2410_v5 = vmax.f32 %v1447_v3, 0.0  ;;  %v2664_v6 = vadd.f32 %v2663_v1, %v2409_v0  ;;  %v3869_v7 = vpop.f32.mrb[22].mxu0  ;;  %v4293_v0 = vld [vmem:[%s5097_s0 + $0x228] sm:$0xff]   ;;  %v2557_v1 = vmax.f32 %v4013_v49, 0.0 }
 0x108   :  { %v1450_v9 = vpop.f32.mrb[23].mxu0  ;;  %v2413_v25 = vmax.f32 %v3869_v7, 0.0 }
 0x109   :  { %v2665_v11 = vadd.f32 %v2664_v6, %v2410_v5  ;;  %v2411_v12 = vmax.f32 %v1450_v9, 0.0  ;;  %v4296_v6 = vld [vmem:[%s5097_s0 + $0x230] sm:$0xff]   ;;  %v4016_v9 = vpop.f32.mrb[20].mxu1 }
 0x10a   :  { %3975 = vmatmul.mubr.msk.bf16.gmra.mrb[128].mxu0 %vm948_vm0, %v4285_v4  ;;  %v2560_v23 = vmax.f32 %v4016_v9, 0.0 }
 0x10b   :  { %v2666_v18 = vadd.f32 %v2665_v11, %v2411_v12  ;;  %3978 = vmatprep.mubr.msk.bf16.mxu0 %vm948_vm0, %v4288_v8  ;;  %v2836_v8 = vadd.f32 %v2835_v2, %v2556_v53  ;;  %v2039_v12 = vpop.f32.mrb[21].mxu1 }
 0x10c   :  { %v2558_v14 = vmax.f32 %v2039_v12, 0.0 }
 0x10d   :  { %v2667_v27 = vadd.f32 %v2666_v18, %v2412_v16  ;;  %v3872_v28 = vpop.f32.mrb[24].mxu0  ;;  %v2837_v15 = vadd.f32 %v2836_v8, %v2557_v1  ;;  %v4017_v16 = vpop.f32.mrb[22].mxu1  ;;  %v4301_v1 = vld [vmem:[%s5097_s0 + $0x248] sm:$0xff]  }
 0x10e   :  { %v1463_v29 = vpop.f32.mrb[25].mxu0  ;;  %v2416_v50 = vmax.f32 %v3872_v28, 0.0  ;;  %v2042_v22 = vpop.f32.mrb[23].mxu1 }
 0x10f   :  { %v2414_v33 = vmax.f32 %v1463_v29, 0.0  ;;  %v2668_v34 = vadd.f32 %v2667_v27, %v2413_v25  ;;  %v3873_v35 = vpop.f32.mrb[26].mxu0  ;;  %v2838_v25 = vadd.f32 %v2837_v15, %v2558_v14  ;;  %v2559_v27 = vmax.f32 %v2042_v22, 0.0 }
 0x110   :  { %v1466_v38 = vpop.f32.mrb[27].mxu0  ;;  %v2417_v57 = vmax.f32 %v3873_v35, 0.0 }
 0x111   :  { %v2669_v43 = vadd.f32 %v2668_v34, %v2414_v33  ;;  %v2415_v45 = vmax.f32 %v1466_v38, 0.0  ;;  %v2561_v33 = vmax.f32 %v4017_v16, 0.0  ;;  %v2839_v34 = vadd.f32 %v2838_v25, %v2559_v27  ;;  %v4300_v38 = vld [vmem:[%s5097_s0 + $0x240] sm:$0xff]  }
 0x112   :  { %3979 = vmatmul.mubr.msk.bf16.gmra.mrb[132].mxu0 %vm948_vm0, %v4289_v30 }
 0x113   :  { %v2670_v51 = vadd.f32 %v2669_v43, %v2415_v45  ;;  %3982 = vmatprep.mubr.msk.bf16.mxu0 %vm948_vm0, %v4292_v36  ;;  %v2840_v42 = vadd.f32 %v2839_v34, %v2560_v23  ;;  %v4020_v43 = vpop.f32.mrb[24].mxu1 }
 0x114   :  { %v2055_v47 = vpop.f32.mrb[25].mxu1  ;;  %v2564_v54 = vmax.f32 %v4020_v43, 0.0 }
 0x115   :  { %v2671_v58 = vadd.f32 %v2670_v51, %v2416_v50  ;;  %v3876_v61 = vpop.f32.mrb[28].mxu0  ;;  %v2562_v48 = vmax.f32 %v2055_v47, 0.0  ;;  %v2841_v49 = vadd.f32 %v2840_v42, %v2561_v33  ;;  %v4021_v50 = vpop.f32.mrb[26].mxu1 }
 0x116   :  { %v1479_v62 = vpop.f32.mrb[29].mxu0  ;;  %v2420_v18 = vmax.f32 %v3876_v61, 0.0  ;;  %v2058_v53 = vpop.f32.mrb[27].mxu1  ;;  %v2565_v2 = vmax.f32 %v4021_v50, 0.0 }
 0x117   :  { %v2418_v3 = vmax.f32 %v1479_v62, 0.0  ;;  %v2672_v4 = vadd.f32 %v2671_v58, %v2417_v57  ;;  %v3877_v5 = vpop.f32.mrb[30].mxu0  ;;  %v2842_v55 = vadd.f32 %v2841_v49, %v2562_v48  ;;  %v2563_v57 = vmax.f32 %v2058_v53, 0.0  ;;  %v4024_v9 = vpop.f32.mrb[28].mxu1 }
 0x118   :  { %v1482_v7 = vpop.f32.mrb[31].mxu0  ;;  %v2421_v28 = vmax.f32 %v3877_v5, 0.0  ;;  %v2071_v12 = vpop.f32.mrb[29].mxu1  ;;  %v2568_v22 = vmax.f32 %v4024_v9, 0.0 }
 0x119   :  { %v2673_v10 = vadd.f32 %v2672_v4, %v2418_v3  ;;  %v2419_v11 = vmax.f32 %v1482_v7, 0.0  ;;  %v2843_v3 = vadd.f32 %v2842_v55, %v2563_v57  ;;  %v2566_v13 = vmax.f32 %v2071_v12, 0.0  ;;  %v4025_v15 = vpop.f32.mrb[30].mxu1 }
 0x11a   :  { %3983 = vmatmul.mubr.msk.bf16.gmra.mrb[136].mxu0 %vm948_vm0, %v4293_v0 }
 0x11b   :  { %v2674_v19 = vadd.f32 %v2673_v10, %v2419_v11  ;;  %3986 = vmatprep.mubr.msk.bf16.mxu0 %vm948_vm0, %v4296_v6  ;;  %v2844_v8 = vadd.f32 %v2843_v3, %v2564_v54 }
 0x11d   :  { %v2675_v29 = vadd.f32 %v2674_v19, %v2420_v18  ;;  %v3880_v30 = vpop.f32.mrb[32].mxu0  ;;  %v2845_v14 = vadd.f32 %v2844_v8, %v2565_v2  ;;  %v2074_v19 = vpop.f32.mrb[31].mxu1 }
 0x11e   :  { %v1495_v31 = vpop.f32.mrb[33].mxu0  ;;  %v2424_v51 = vmax.f32 %v3880_v30, 0.0  ;;  %v2567_v25 = vmax.f32 %v2074_v19, 0.0  ;;  %v4028_v42 = vpop.f32.mrb[32].mxu1 }
 0x11f   :  { %v4935_v35 = vadd.f32 %v2675_v29, %v2421_v28  ;;  %v3881_v36 = vpop.f32.mrb[34].mxu0  ;;  %v2422_v45 = vmax.f32 %v1495_v31, 0.0  ;;  %v2846_v23 = vadd.f32 %v2845_v14, %v2566_v13  ;;  %v2569_v31 = vmax.f32 %v4025_v15, 0.0 }
 0x120   :  { %v1498_v39 = vpop.f32.mrb[35].mxu0  ;;  %v2425_v58 = vmax.f32 %v3881_v36, 0.0  ;;  %v2572_v53 = vmax.f32 %v4028_v42, 0.0 }
 0x121   :  { %v2423_v46 = vmax.f32 %v1498_v39, 0.0 }
 0x122   :  { %3987 = vmatmul.mubr.msk.bf16.gmra.mrb[140].mxu0 %vm948_vm0, %v4297_v32  ;;  %v2847_v32 = vadd.f32 %v2846_v23, %v2567_v25 }
 0x123   :  { %v2683_v52 = vadd.f32 %v2423_v46, %v2422_v45  ;;  %3990 = vmatprep.mubr.msk.bf16.mxu0 %vm948_vm0, %v4300_v38  ;;  %v2087_v46 = vpop.f32.mrb[33].mxu1 }
 0x124   :  { %v2848_v39 = vadd.f32 %v2847_v32, %v2568_v22  ;;  %v2570_v47 = vmax.f32 %v2087_v46, 0.0  ;;  %v4029_v49 = vpop.f32.mrb[34].mxu1 }
 0x125   :  { %v2684_v61 = vadd.f32 %v2683_v52, %v2424_v51  ;;  %v3884_v62 = vpop.f32.mrb[36].mxu0  ;;  %v2090_v52 = vpop.f32.mrb[35].mxu1 }
 0x126   :  { %v1511_v0 = vpop.f32.mrb[37].mxu0  ;;  %v2428_v16 = vmax.f32 %v3884_v62, 0.0  ;;  %v2849_v48 = vadd.f32 %v2848_v39, %v2569_v31  ;;  %v2571_v55 = vmax.f32 %v2090_v52, 0.0  ;;  %v4309_v62 = vld [vmem:[%s5098_s4 + $0x18] sm:$0xff]   ;;  %v4032_v8 = vpop.f32.mrb[36].mxu1 }
 0x127   :  { %v2426_v4 = vmax.f32 %v1511_v0, 0.0  ;;  %v2685_v5 = vadd.f32 %v2684_v61, %v2425_v58  ;;  %v3885_v6 = vpop.f32.mrb[38].mxu0  ;;  %4109 = vmatpush3.bf16.msra.mxu1 %v4309_v62  ;;  %v2576_v19 = vmax.f32 %v4032_v8, 0.0 }
 0x128   :  { %v1514_v7 = vpop.f32.mrb[39].mxu0  ;;  %v2429_v27 = vmax.f32 %v3885_v6, 0.0  ;;  %v2850_v54 = vadd.f32 %v2849_v48, %v2570_v47  ;;  %4110 = vmatprep.subr.bf16.mxu1 %v4332_v26 }
 0x129   :  { %v2686_v10 = vadd.f32 %v2685_v5, %v2426_v4  ;;  %v2427_v11 = vmax.f32 %v1514_v7, 0.0 }
 0x12a   :  { %3991 = vmatmul.mubr.msk.bf16.gmra.mrb[144].mxu0 %vm948_vm0, %v4301_v1  ;;  %v2573_v1 = vmax.f32 %v4029_v49, 0.0  ;;  %v2851_v2 = vadd.f32 %v2850_v54, %v2571_v55 }
 0x12b   :  { %v2687_v18 = vadd.f32 %v2686_v10, %v2427_v11  ;;  %v2103_v11 = vpop.f32.mrb[37].mxu1 }
 0x12c   :  { %v2852_v7 = vadd.f32 %v2851_v2, %v2572_v53  ;;  %v2574_v12 = vmax.f32 %v2103_v11, 0.0  ;;  %v4033_v14 = vpop.f32.mrb[38].mxu1 }
 0x12d   :  { %v2688_v28 = vadd.f32 %v2687_v18, %v2428_v16  ;;  %v3888_v29 = vpop.f32.mrb[40].mxu0  ;;  %v2106_v18 = vpop.f32.mrb[39].mxu1 }
 0x12e   :  { %v1527_v30 = vpop.f32.mrb[41].mxu0  ;;  %v2432_v50 = vmax.f32 %v3888_v29, 0.0  ;;  %v2853_v13 = vadd.f32 %v2852_v7, %v2573_v1  ;;  %v2575_v23 = vmax.f32 %v2106_v18, 0.0  ;;  %v4036_v39 = vpop.f32.mrb[40].mxu1 }
 0x12f   :  { %v2430_v33 = vmax.f32 %v1527_v30, 0.0  ;;  %v2689_v34 = vadd.f32 %v2688_v28, %v2429_v27  ;;  %v3889_v36 = vpop.f32.mrb[42].mxu0  ;;  %v2577_v30 = vmax.f32 %v4033_v14, 0.0  ;;  %v2580_v52 = vmax.f32 %v4036_v39, 0.0 }
 0x130   :  { %v1530_v38 = vpop.f32.mrb[43].mxu0  ;;  %v2433_v57 = vmax.f32 %v3889_v36, 0.0  ;;  %v2854_v22 = vadd.f32 %v2853_v13, %v2574_v12 }
 0x131   :  { %v2690_v43 = vadd.f32 %v2689_v34, %v2430_v33  ;;  %v2431_v45 = vmax.f32 %v1530_v38, 0.0 }
 0x132   :  { %v2855_v31 = vadd.f32 %v2854_v22, %v2575_v23 }
 0x133   :  { %v2691_v51 = vadd.f32 %v2690_v43, %v2431_v45  ;;  %v2119_v45 = vpop.f32.mrb[41].mxu1 }
 0x134   :  { %v2856_v38 = vadd.f32 %v2855_v31, %v2576_v19  ;;  %v2578_v46 = vmax.f32 %v2119_v45, 0.0  ;;  %v4037_v48 = vpop.f32.mrb[42].mxu1 }
 0x135   :  { %v2692_v58 = vadd.f32 %v2691_v51, %v2432_v50  ;;  %v3892_v61 = vpop.f32.mrb[44].mxu0  ;;  %v2122_v51 = vpop.f32.mrb[43].mxu1  ;;  %v2581_v62 = vmax.f32 %v4037_v48, 0.0 }
 0x136   :  { %v1543_v0 = vpop.f32.mrb[45].mxu0  ;;  %v2436_v15 = vmax.f32 %v3892_v61, 0.0  ;;  %v2857_v47 = vadd.f32 %v2856_v38, %v2577_v30  ;;  %v2579_v54 = vmax.f32 %v2122_v51, 0.0  ;;  %v2677_v38 = vrot.slane %v4935_v35, 4 }
 0x137   :  { %v2434_v3 = vmax.f32 %v1543_v0, 0.0  ;;  %v2693_v4 = vadd.f32 %v2692_v58, %v2433_v57  ;;  %v3893_v5 = vpop.f32.mrb[46].mxu0 }
 0x138   :  { %v1546_v6 = vpop.f32.mrb[47].mxu0  ;;  %v2437_v25 = vmax.f32 %v3893_v5, 0.0  ;;  %v2858_v53 = vadd.f32 %v2857_v47, %v2578_v46 }
 0x139   :  { %v2694_v9 = vadd.f32 %v2693_v4, %v2434_v3  ;;  %v2435_v10 = vmax.f32 %v1546_v6, 0.0  ;;  %v4040_v6 = vpop.f32.mrb[44].mxu1 }
 0x13a   :  { %v2859_v0 = vadd.f32 %v2858_v53, %v2579_v54  ;;  %v2678_v54 = vadd.f32 %v2677_v38, %v4935_v35 }
 0x13b   :  { %v2695_v16 = vadd.f32 %v2694_v9, %v2435_v10  ;;  %v2135_v9 = vpop.f32.mrb[45].mxu1 }
 0x13c   :  { %v2860_v5 = vadd.f32 %v2859_v0, %v2580_v52  ;;  %v2582_v11 = vmax.f32 %v2135_v9, 0.0  ;;  %v4041_v12 = vpop.f32.mrb[46].mxu1 }
 0x13d   :  { %v2696_v27 = vadd.f32 %v2695_v16, %v2436_v15  ;;  %v3896_v28 = vpop.f32.mrb[48].mxu0  ;;  %v2138_v15 = vpop.f32.mrb[47].mxu1  ;;  %v2584_v16 = vmax.f32 %v4040_v6, 0.0 }
 0x13e   :  { %v1559_v29 = vpop.f32.mrb[49].mxu0  ;;  %v2440_v49 = vmax.f32 %v3896_v28, 0.0  ;;  %v4950_v10 = vadd.f32 %v2860_v5, %v2581_v62  ;;  %v2583_v18 = vmax.f32 %v2138_v15, 0.0 }
 0x13f   :  { %v2438_v32 = vmax.f32 %v1559_v29, 0.0  ;;  %v2697_v33 = vadd.f32 %v2696_v27, %v2437_v25  ;;  %v3897_v34 = vpop.f32.mrb[50].mxu0  ;;  %v2585_v27 = vmax.f32 %v4041_v12, 0.0  ;;  %v4310_v29 = vld [vmem:[%s5098_s4 + $0x20] sm:$0xff]  }
 0x140   :  { %v1562_v36 = vpop.f32.mrb[51].mxu0  ;;  %v2441_v55 = vmax.f32 %v3897_v34, 0.0  ;;  %v2868_v28 = vadd.f32 %v2583_v18, %v2582_v11  ;;  %4111 = vmatpush3.bf16.msra.mxu1 %v4310_v29 }
 0x141   :  { %v2698_v42 = vadd.f32 %v2697_v33, %v2438_v32  ;;  %v2439_v43 = vmax.f32 %v1562_v36, 0.0  ;;  %v4044_v36 = vpop.f32.mrb[48].mxu1  ;;  %4112 = vmatprep.subr.bf16.mxu1 %v4332_v26 }
 0x142   :  { %v2869_v34 = vadd.f32 %v2868_v28, %v2584_v16  ;;  %v2588_v51 = vmax.f32 %v4044_v36, 0.0 }
 0x143   :  { %v2699_v50 = vadd.f32 %v2698_v42, %v2439_v43  ;;  %v2151_v43 = vpop.f32.mrb[49].mxu1 }
 0x144   :  { %v2586_v45 = vmax.f32 %v2151_v43, 0.0  ;;  %v2870_v46 = vadd.f32 %v2869_v34, %v2585_v27  ;;  %v4045_v47 = vpop.f32.mrb[50].mxu1 }
 0x145   :  { %v2700_v57 = vadd.f32 %v2699_v50, %v2440_v49  ;;  %v3900_v58 = vpop.f32.mrb[52].mxu0  ;;  %v2154_v50 = vpop.f32.mrb[51].mxu1  ;;  %v2589_v62 = vmax.f32 %v4045_v47, 0.0 }
 0x146   :  { %v1575_v61 = vpop.f32.mrb[53].mxu0  ;;  %v2444_v13 = vmax.f32 %v3900_v58, 0.0  ;;  %v2871_v52 = vadd.f32 %v2870_v46, %v2586_v45  ;;  %v2587_v53 = vmax.f32 %v2154_v50, 0.0  ;;  %v4048_v6 = vpop.f32.mrb[52].mxu1 }
 0x147   :  { %v2442_v1 = vmax.f32 %v1575_v61, 0.0  ;;  %v2701_v2 = vadd.f32 %v2700_v57, %v2441_v55  ;;  %v3901_v3 = vpop.f32.mrb[54].mxu0  ;;  %v2167_v11 = vpop.f32.mrb[53].mxu1  ;;  %v2592_v18 = vmax.f32 %v4048_v6, 0.0 }
 0x148   :  { %v1578_v4 = vpop.f32.mrb[55].mxu0  ;;  %v2445_v19 = vmax.f32 %v3901_v3, 0.0  ;;  %v2872_v0 = vadd.f32 %v2871_v52, %v2587_v53  ;;  %v2590_v12 = vmax.f32 %v2167_v11, 0.0 }
 0x149   :  { %v2702_v7 = vadd.f32 %v2701_v2, %v2442_v1  ;;  %v2443_v8 = vmax.f32 %v1578_v4, 0.0 }
 0x14a   :  { %v2873_v5 = vadd.f32 %v2872_v0, %v2588_v51 }
 0x14b   :  { %v2703_v14 = vadd.f32 %v2702_v7, %v2443_v8  ;;  %v2679_v7 = vrot.slane %v2678_v54, 2 }
 0x14d   :  { %v2704_v22 = vadd.f32 %v2703_v14, %v2444_v13  ;;  %v3904_v23 = vpop.f32.mrb[56].mxu0  ;;  %v2874_v13 = vadd.f32 %v2873_v5, %v2589_v62  ;;  %v4049_v14 = vpop.f32.mrb[54].mxu1 }
 0x14e   :  { %v1591_v25 = vpop.f32.mrb[57].mxu0  ;;  %v2448_v48 = vmax.f32 %v3904_v23, 0.0  ;;  %v2170_v16 = vpop.f32.mrb[55].mxu1  ;;  %v2680_v23 = vadd.f32 %v2679_v7, %v2678_v54 }
 0x14f   :  { %v2446_v30 = vmax.f32 %v1591_v25, 0.0  ;;  %v2705_v31 = vadd.f32 %v2704_v22, %v2445_v19  ;;  %v3905_v32 = vpop.f32.mrb[58].mxu0  ;;  %v2875_v19 = vadd.f32 %v2874_v13, %v2590_v12  ;;  %v2591_v22 = vmax.f32 %v2170_v16, 0.0  ;;  %v4052_v38 = vpop.f32.mrb[56].mxu1 }
 0x150   :  { %v1594_v33 = vpop.f32.mrb[59].mxu0  ;;  %v2449_v55 = vmax.f32 %v3905_v32, 0.0  ;;  %v2183_v46 = vpop.f32.mrb[57].mxu1  ;;  %v2596_v54 = vmax.f32 %v4052_v38, 0.0 }
 0x151   :  { %v2706_v39 = vadd.f32 %v2705_v31, %v2446_v30  ;;  %v2447_v42 = vmax.f32 %v1594_v33, 0.0  ;;  %v2593_v30 = vmax.f32 %v4049_v14, 0.0  ;;  %v2876_v31 = vadd.f32 %v2875_v19, %v2591_v22 }
 0x152   :  { %v2594_v47 = vmax.f32 %v2183_v46, 0.0 }
 0x153   :  { %v2707_v49 = vadd.f32 %v2706_v39, %v2447_v42  ;;  %v2877_v36 = vadd.f32 %v2876_v31, %v2592_v18  ;;  %v2681_v39 = vrot.slane %v2680_v23, 1 }
 0x155   :  { %v2708_v57 = vadd.f32 %v2707_v49, %v2448_v48  ;;  %v3908_v58 = vpop.f32.mrb[60].mxu0  ;;  %v2878_v48 = vadd.f32 %v2877_v36, %v2593_v30  ;;  %v4053_v49 = vpop.f32.mrb[58].mxu1 }
 0x156   :  { %v1607_v61 = vpop.f32.mrb[61].mxu0  ;;  %v2452_v35 = vmax.f32 %v3908_v58, 0.0  ;;  %v2186_v53 = vpop.f32.mrb[59].mxu1  ;;  %v2682_v58 = vadd.f32 %v2681_v39, %v2680_v23 }
 0x157   :  { %v2450_v1 = vmax.f32 %v1607_v61, 0.0  ;;  %v2709_v2 = vadd.f32 %v2708_v57, %v2449_v55  ;;  %v3909_v3 = vpop.f32.mrb[62].mxu0  ;;  %v2879_v55 = vadd.f32 %v2878_v48, %v2594_v47  ;;  %v2595_v57 = vmax.f32 %v2186_v53, 0.0  ;;  %v4056_v12 = vpop.f32.mrb[60].mxu1 }
 0x158   :  { %v1610_v4 = vpop.f32.mrb[63].mxu0  ;;  %v2453_v25 = vmax.f32 %v3909_v3, 0.0  ;;  %v2597_v3 = vmax.f32 %v4053_v49, 0.0  ;;  %v2943_v13 = vmul.f32 0.00390625, %v2682_v58  ;;  %v2199_v16 = vpop.f32.mrb[61].mxu1 }
 0x159   :  { %v2710_v8 = vadd.f32 %v2709_v2, %v2450_v1  ;;  %v2451_v9 = vmax.f32 %v1610_v4, 0.0  ;;  %v2880_v4 = vadd.f32 %v2879_v55, %v2595_v57  ;;  %v2598_v18 = vmax.f32 %v2199_v16, 0.0  ;;  %v4057_v22 = vpop.f32.mrb[62].mxu1 }
 0x15b   :  { %v2711_v15 = vadd.f32 %v2710_v8, %v2451_v9  ;;  %v2881_v11 = vadd.f32 %v2880_v4, %v2596_v54  ;;  %v4311_v4 = vld [vmem:[%s5098_s4 + $0x28] sm:$0xff]  }
 0x15c   :  { %4113 = vmatpush3.bf16.msra.mxu1 %v4311_v4 }
 0x15d   :  { %v2712_v27 = vadd.f32 %v2711_v15, %v2452_v35  ;;  %v3912_v28 = vpop.f32.mrb[64].mxu0  ;;  %v2882_v19 = vadd.f32 %v2881_v11, %v2597_v3  ;;  %4114 = vmatprep.subr.bf16.mxu1 %v4332_v26 }
 0x15e   :  { %v1623_v29 = vpop.f32.mrb[65].mxu0  ;;  %v2456_v51 = vmax.f32 %v3912_v28, 0.0  ;;  %v2202_v28 = vpop.f32.mrb[63].mxu1 }
 0x15f   :  { %v2713_v32 = vadd.f32 %v2712_v27, %v2453_v25  ;;  %v3913_v33 = vpop.f32.mrb[66].mxu0  ;;  %v2454_v43 = vmax.f32 %v1623_v29, 0.0  ;;  %v2600_v29 = vmax.f32 %v4056_v12, 0.0  ;;  %v2883_v30 = vadd.f32 %v2882_v19, %v2598_v18 }
 0x160   :  { %v1626_v34 = vpop.f32.mrb[67].mxu0  ;;  %v2457_v62 = vmax.f32 %v3913_v33, 0.0  ;;  %v2599_v31 = vmax.f32 %v2202_v28, 0.0 }
 0x161   :  { %v2714_v42 = vrot.slane %v2713_v32, 4  ;;  %v2455_v45 = vmax.f32 %v1626_v34, 0.0 }
 0x163   :  { %v2715_v50 = vadd.f32 %v2714_v42, %v2713_v32  ;;  %v2720_v52 = vadd.f32 %v2455_v45, %v2454_v43  ;;  %v2956_v32 = vpack.c.bf16 %v2943_v13, %v2943_v13  ;;  %v2601_v42 = vmax.f32 %v4057_v22, 0.0 }
 0x164   :  { %v2884_v43 = vadd.f32 %v2883_v30, %v2599_v31 }
 0x165   :  { %v2716_v61 = vrot.slane %v2715_v50, 2  ;;  %v2721_v0 = vadd.f32 %v2720_v52, %v2456_v51  ;;  %v3916_v1 = vpop.f32.mrb[68].mxu0  ;;  %v4060_v51 = vpop.f32.mrb[64].mxu1  ;;  %v2988_v52 = vunpack.c.l.b16 %v2956_v32 }
 0x166   :  { %v1639_v2 = vpop.f32.mrb[69].mxu0  ;;  %v2460_v25 = vmax.f32 %v3916_v1, 0.0  ;;  %v2215_v57 = vpop.f32.mrb[65].mxu1 }
 0x167   :  { %v2717_v5 = vadd.f32 %v2716_v61, %v2715_v50  ;;  %v2458_v6 = vmax.f32 %v1639_v2, 0.0  ;;  %v2722_v7 = vadd.f32 %v2721_v0, %v2457_v62  ;;  %v3917_v8 = vpop.f32.mrb[70].mxu0  ;;  %v2885_v50 = vadd.f32 %v2884_v43, %v2600_v29  ;;  %v4061_v62 = vpop.f32.mrb[66].mxu1 }
 0x168   :  { %v1642_v9 = vpop.f32.mrb[71].mxu0  ;;  %v2461_v34 = vmax.f32 %v3917_v8, 0.0  ;;  %v2602_v58 = vmax.f32 %v2215_v57, 0.0  ;;  %v2218_v3 = vpop.f32.mrb[67].mxu1  ;;  %v2605_v13 = vmax.f32 %v4061_v62, 0.0 }
 0x169   :  { %v2718_v14 = vrot.slane %v2717_v5, 1  ;;  %v2723_v35 = vadd.f32 %v2722_v7, %v2458_v6  ;;  %v2459_v15 = vmax.f32 %v1642_v9, 0.0  ;;  %v2886_v61 = vadd.f32 %v2885_v50, %v2601_v42  ;;  %v4064_v22 = vpop.f32.mrb[68].mxu1 }
 0x16a   :  { %v2603_v7 = vmax.f32 %v2218_v3, 0.0 }
 0x16b   :  { %v2719_v23 = vadd.f32 %v2718_v14, %v2717_v5  ;;  %v2724_v27 = vadd.f32 %v2723_v35, %v2459_v15  ;;  %v2604_v5 = vmax.f32 %v4060_v51, 0.0  ;;  %v2887_v6 = vadd.f32 %v2886_v61, %v2602_v58 }
 0x16d   :  { %v2944_v33 = vmul.f32 0.00390625, %v2719_v23  ;;  %v2725_v36 = vadd.f32 %v2724_v27, %v2460_v25  ;;  %v3920_v38 = vpop.f32.mrb[72].mxu0  ;;  %v2888_v14 = vadd.f32 %v2887_v6, %v2603_v7  ;;  %v2231_v27 = vpop.f32.mrb[69].mxu1 }
 0x16e   :  { %v1655_v39 = vpop.f32.mrb[73].mxu0  ;;  %v2464_v1 = vmax.f32 %v3920_v38, 0.0  ;;  %v2606_v28 = vmax.f32 %v2231_v27, 0.0  ;;  %v4065_v30 = vpop.f32.mrb[70].mxu1 }
 0x16f   :  { %v2957_v45 = vpack.c.bf16 %v2944_v33, %v2944_v33  ;;  %v2462_v46 = vmax.f32 %v1655_v39, 0.0  ;;  %v2726_v47 = vadd.f32 %v2725_v36, %v2461_v34  ;;  %v3921_v48 = vpop.f32.mrb[74].mxu0  ;;  %v2889_v19 = vadd.f32 %v2888_v14, %v2604_v5  ;;  %v2234_v33 = vpop.f32.mrb[71].mxu1 }
 0x170   :  { %v1658_v49 = vpop.f32.mrb[75].mxu0  ;;  %v2465_v8 = vmax.f32 %v3921_v48, 0.0  ;;  %v2608_v34 = vmax.f32 %v4064_v22, 0.0  ;;  %v2607_v38 = vmax.f32 %v2234_v33, 0.0 }
 0x171   :  { %v2989_v53 = vunpack.c.l.b16 %v2957_v45  ;;  %v2727_v54 = vadd.f32 %v2726_v47, %v2462_v46  ;;  %v2463_v55 = vmax.f32 %v1658_v49, 0.0  ;;  %v2890_v29 = vadd.f32 %v2889_v19, %v2605_v13 }
 0x172   :  { %v2609_v46 = vmax.f32 %v4065_v30, 0.0 }
 0x173   :  { %v4958_v0 = vsel %vm2996_vm1, %v2989_v53, %v2988_v52  ;;  %v2728_v2 = vadd.f32 %v2727_v54, %v2463_v55  ;;  %v2891_v36 = vadd.f32 %v2890_v29, %v2606_v28  ;;  %v4068_v53 = vpop.f32.mrb[72].mxu1 }
 0x174   :  { %v2247_v57 = vpop.f32.mrb[73].mxu1  ;;  %v2612_v4 = vmax.f32 %v4068_v53, 0.0 }
 0x175   :  { %v2729_v9 = vadd.f32 %v2728_v2, %v2464_v1  ;;  %v3924_v11 = vpop.f32.mrb[76].mxu0  ;;  %v2892_v47 = vadd.f32 %v2891_v36, %v2607_v38  ;;  %v2610_v58 = vmax.f32 %v2247_v57, 0.0  ;;  %v4069_v62 = vpop.f32.mrb[74].mxu1 }
 0x176   :  { %v1671_v12 = vpop.f32.mrb[77].mxu0  ;;  %v2468_v31 = vmax.f32 %v3924_v11, 0.0  ;;  %v2250_v3 = vpop.f32.mrb[75].mxu1 }
 0x177   :  { %v2466_v35 = vmax.f32 %v1671_v12, 0.0  ;;  %v2730_v15 = vadd.f32 %v2729_v9, %v2465_v8  ;;  %v3925_v16 = vpop.f32.mrb[78].mxu0  ;;  %v2893_v52 = vadd.f32 %v2892_v47, %v2608_v34  ;;  %v2611_v6 = vmax.f32 %v2250_v3, 0.0  ;;  %v4072_v19 = vpop.f32.mrb[76].mxu1 }
 0x178   :  { %v1674_v18 = vpop.f32.mrb[79].mxu0  ;;  %v2469_v39 = vmax.f32 %v3925_v16, 0.0  ;;  %v2613_v12 = vmax.f32 %v4069_v62, 0.0  ;;  %v2616_v33 = vmax.f32 %v4072_v19, 0.0 }
 0x179   :  { %v2731_v23 = vadd.f32 %v2730_v15, %v2466_v35  ;;  %v2467_v25 = vmax.f32 %v1674_v18, 0.0  ;;  %v2894_v61 = vadd.f32 %v2893_v52, %v2609_v46 }
 0x17b   :  { %v2732_v32 = vadd.f32 %v2731_v23, %v2467_v25  ;;  %v2895_v5 = vadd.f32 %v2894_v61, %v2610_v58  ;;  %v2263_v25 = vpop.f32.mrb[77].mxu1 }
 0x17c   :  { %v2614_v28 = vmax.f32 %v2263_v25, 0.0  ;;  %v4073_v29 = vpop.f32.mrb[78].mxu1 }
 0x17d   :  { %v2733_v42 = vadd.f32 %v2732_v32, %v2468_v31  ;;  %v3928_v43 = vpop.f32.mrb[80].mxu0  ;;  %v2896_v13 = vadd.f32 %v2895_v5, %v2611_v6  ;;  %v2266_v32 = vpop.f32.mrb[79].mxu1 }
 0x17e   :  { %v1687_v45 = vpop.f32.mrb[81].mxu0  ;;  %v2472_v1 = vmax.f32 %v3928_v43, 0.0  ;;  %v2615_v34 = vmax.f32 %v2266_v32, 0.0  ;;  %v2617_v43 = vmax.f32 %v4073_v29, 0.0 }
 0x17f   :  { %v2470_v48 = vmax.f32 %v1687_v45, 0.0  ;;  %v2734_v49 = vadd.f32 %v2733_v42, %v2469_v39  ;;  %v3929_v50 = vpop.f32.mrb[82].mxu0  ;;  %v2897_v18 = vadd.f32 %v2896_v13, %v2612_v4 }
 0x180   :  { %v1690_v51 = vpop.f32.mrb[83].mxu0  ;;  %v2473_v7 = vmax.f32 %v3929_v50, 0.0  ;;  %v2905_v45 = vadd.f32 %v2615_v34, %v2614_v28 }
 0x181   :  { %v2735_v54 = vadd.f32 %v2734_v49, %v2470_v48  ;;  %v2471_v55 = vmax.f32 %v1690_v51, 0.0  ;;  %v4964_v27 = vadd.f32 %v2897_v18, %v2613_v12  ;;  %v4076_v51 = vpop.f32.mrb[80].mxu1 }
 0x182   :  { %v2906_v50 = vadd.f32 %v2905_v45, %v2616_v33 }
 0x183   :  { %v2736_v2 = vadd.f32 %v2735_v54, %v2471_v55  ;;  %v2279_v54 = vpop.f32.mrb[81].mxu1 }
 0x184   :  { %v2618_v55 = vmax.f32 %v2279_v54, 0.0  ;;  %v2907_v57 = vadd.f32 %v2906_v50, %v2617_v43  ;;  %v4077_v58 = vpop.f32.mrb[82].mxu1 }
 0x185   :  { %v2737_v8 = vadd.f32 %v2736_v2, %v2472_v1  ;;  %v3932_v9 = vpop.f32.mrb[84].mxu0  ;;  %v2282_v1 = vpop.f32.mrb[83].mxu1  ;;  %v2620_v2 = vmax.f32 %v4076_v51, 0.0 }
 0x186   :  { %v1703_v11 = vpop.f32.mrb[85].mxu0  ;;  %v2476_v30 = vmax.f32 %v3932_v9, 0.0  ;;  %v2908_v3 = vadd.f32 %v2907_v57, %v2618_v55  ;;  %v2619_v4 = vmax.f32 %v2282_v1, 0.0  ;;  %v2621_v9 = vmax.f32 %v4077_v58, 0.0  ;;  %v4313_v57 = vld [vmem:[%s5098_s4 + $0x38] sm:$0xff]  }
 0x187   :  { %v2474_v14 = vmax.f32 %v1703_v11, 0.0  ;;  %v2738_v35 = vadd.f32 %v2737_v8, %v2473_v7  ;;  %v3933_v15 = vpop.f32.mrb[86].mxu0 }
 0x188   :  { %v1706_v16 = vpop.f32.mrb[87].mxu0  ;;  %v2477_v36 = vmax.f32 %v3933_v15, 0.0  ;;  %v2909_v11 = vadd.f32 %v2908_v3, %v2619_v4 }
 0x189   :  { %v2739_v22 = vadd.f32 %v2738_v35, %v2474_v14  ;;  %v2475_v23 = vmax.f32 %v1706_v16, 0.0  ;;  %v4080_v16 = vpop.f32.mrb[84].mxu1 }
 0x18a   :  { %v2910_v15 = vadd.f32 %v2909_v11, %v2620_v2  ;;  %v2624_v32 = vmax.f32 %v4080_v16, 0.0 }
 0x18b   :  { %v2740_v31 = vadd.f32 %v2739_v22, %v2475_v23  ;;  %v2295_v22 = vpop.f32.mrb[85].mxu1 }
 0x18c   :  { %v2622_v23 = vmax.f32 %v2295_v22, 0.0  ;;  %v2911_v25 = vadd.f32 %v2910_v15, %v2621_v9  ;;  %v4081_v28 = vpop.f32.mrb[86].mxu1 }
 0x18d   :  { %v2741_v38 = vadd.f32 %v2740_v31, %v2476_v30  ;;  %v3936_v39 = vpop.f32.mrb[88].mxu0  ;;  %v2298_v31 = vpop.f32.mrb[87].mxu1  ;;  %v2625_v43 = vmax.f32 %v4081_v28, 0.0 }
 0x18e   :  { %v1719_v42 = vpop.f32.mrb[89].mxu0  ;;  %v2480_v61 = vmax.f32 %v3936_v39, 0.0  ;;  %v2912_v33 = vadd.f32 %v2911_v25, %v2622_v23  ;;  %v2623_v34 = vmax.f32 %v2298_v31, 0.0  ;;  %v4084_v51 = vpop.f32.mrb[88].mxu1 }
 0x18f   :  { %v2478_v46 = vmax.f32 %v1719_v42, 0.0  ;;  %v2742_v47 = vadd.f32 %v2741_v38, %v2477_v36  ;;  %v3937_v48 = vpop.f32.mrb[90].mxu0  ;;  %v2311_v55 = vpop.f32.mrb[89].mxu1 }
 0x190   :  { %v1722_v49 = vpop.f32.mrb[91].mxu0  ;;  %v2481_v5 = vmax.f32 %v3937_v48, 0.0  ;;  %v2913_v45 = vadd.f32 %v2912_v33, %v2623_v34  ;;  %v4312_v48 = vld [vmem:[%s5098_s4 + $0x30] sm:$0xff]   ;;  %v2626_v58 = vmax.f32 %v2311_v55, 0.0 }
 0x191   :  { %v2743_v52 = vadd.f32 %v2742_v47, %v2478_v46  ;;  %v2479_v53 = vmax.f32 %v1722_v49, 0.0  ;;  %4115 = vmatpush3.bf16.msra.mxu1 %v4312_v48 }
 0x192   :  { %v2914_v50 = vadd.f32 %v2913_v45, %v2624_v32  ;;  %4116 = vmatprep.subr.bf16.mxu1 %v4332_v26 }
 0x193   :  { %v2744_v62 = vadd.f32 %v2743_v52, %v2479_v53 }
 0x195   :  { %v2745_v6 = vadd.f32 %v2744_v62, %v2480_v61  ;;  %v3940_v7 = vpop.f32.mrb[92].mxu0  ;;  %v2915_v61 = vadd.f32 %v2914_v50, %v2625_v43  ;;  %v4085_v62 = vpop.f32.mrb[90].mxu1  ;;  %4117 = vmatpush3.bf16.msra.mxu1 %v4313_v57 }
 0x196   :  { %v1735_v8 = vpop.f32.mrb[93].mxu0  ;;  %v2484_v29 = vmax.f32 %v3940_v7, 0.0  ;;  %v2314_v4 = vpop.f32.mrb[91].mxu1  ;;  %4122 = vmatprep.subr.bf16.mxu1 %v4332_v26 }
 0x197   :  { %v2482_v12 = vmax.f32 %v1735_v8, 0.0  ;;  %v2746_v13 = vadd.f32 %v2745_v6, %v2481_v5  ;;  %v3941_v14 = vpop.f32.mrb[94].mxu0  ;;  %v2628_v5 = vmax.f32 %v4084_v51, 0.0  ;;  %v2916_v6 = vadd.f32 %v2915_v61, %v2626_v58  ;;  %v4088_v25 = vpop.f32.mrb[92].mxu1 }
 0x198   :  { %v1738_v35 = vpop.f32.mrb[95].mxu0  ;;  %v2485_v36 = vmax.f32 %v3941_v14, 0.0  ;;  %v2627_v7 = vmax.f32 %v2314_v4, 0.0  ;;  %v2629_v14 = vmax.f32 %v4085_v62, 0.0  ;;  %v2327_v31 = vpop.f32.mrb[93].mxu1  ;;  %v2632_v43 = vmax.f32 %v4088_v25, 0.0 }
 0x199   :  { %v2747_v18 = vadd.f32 %v2746_v13, %v2482_v12  ;;  %v2483_v19 = vmax.f32 %v1738_v35, 0.0  ;;  %v2630_v32 = vmax.f32 %v2327_v31, 0.0  ;;  %v4089_v34 = vpop.f32.mrb[94].mxu1 }
 0x19a   :  { %v2917_v35 = vadd.f32 %v2916_v6, %v2627_v7 }
 0x19b   :  { %v2748_v30 = vadd.f32 %v2747_v18, %v2483_v19 }
 0x19c   :  { %v2918_v23 = vadd.f32 %v2917_v35, %v2628_v5 }
 0x19d   :  { %v2749_v38 = vadd.f32 %v2748_v30, %v2484_v29  ;;  %v3944_v39 = vpop.f32.mrb[96].mxu0 }
 0x19e   :  { %v1751_v42 = vpop.f32.mrb[97].mxu0  ;;  %v2488_v2 = vmax.f32 %v3944_v39, 0.0  ;;  %v2919_v33 = vadd.f32 %v2918_v23, %v2629_v14 }
 0x19f   :  { %v2750_v46 = vadd.f32 %v2749_v38, %v2485_v36  ;;  %v3945_v47 = vpop.f32.mrb[98].mxu0  ;;  %v2486_v53 = vmax.f32 %v1751_v42, 0.0  ;;  %v2330_v42 = vpop.f32.mrb[95].mxu1 }
 0x1a0   :  { %v1754_v49 = vpop.f32.mrb[99].mxu0  ;;  %v2489_v9 = vmax.f32 %v3945_v47, 0.0  ;;  %v2920_v45 = vadd.f32 %v2919_v33, %v2630_v32 }
 0x1a1   :  { %v2751_v52 = vrot.slane %v2750_v46, 4  ;;  %v2487_v54 = vmax.f32 %v1754_v49, 0.0 }
 0x1a3   :  { %v2752_v1 = vadd.f32 %v2751_v52, %v2750_v46  ;;  %v2757_v3 = vadd.f32 %v2487_v54, %v2486_v53  ;;  %v2631_v46 = vmax.f32 %v2330_v42, 0.0  ;;  %v2633_v52 = vmax.f32 %v4089_v34, 0.0 }
 0x1a5   :  { %v2753_v8 = vrot.slane %v2752_v1, 2  ;;  %v2758_v11 = vadd.f32 %v2757_v3, %v2488_v2  ;;  %v3948_v12 = vpop.f32.mrb[100].mxu0  ;;  %v2921_v53 = vadd.f32 %v2920_v45, %v2631_v46 }
 0x1a6   :  { %v1767_v13 = vpop.f32.mrb[101].mxu0  ;;  %v2492_v38 = vmax.f32 %v3948_v12, 0.0 }
 0x1a7   :  { %v2754_v15 = vadd.f32 %v2753_v8, %v2752_v1  ;;  %v2490_v16 = vmax.f32 %v1767_v13, 0.0  ;;  %v2759_v18 = vadd.f32 %v2758_v11, %v2489_v9  ;;  %v3949_v19 = vpop.f32.mrb[102].mxu0  ;;  %v2922_v62 = vadd.f32 %v2921_v53, %v2632_v43  ;;  %v4092_v1 = vpop.f32.mrb[96].mxu1 }
 0x1a8   :  { %v1770_v22 = vpop.f32.mrb[103].mxu0  ;;  %v2493_v48 = vmax.f32 %v3949_v19, 0.0  ;;  %v2343_v5 = vpop.f32.mrb[97].mxu1  ;;  %v2636_v14 = vmax.f32 %v4092_v1, 0.0 }
 0x1a9   :  { %v2755_v28 = vrot.slane %v2754_v15, 1  ;;  %v2760_v29 = vadd.f32 %v2759_v18, %v2490_v16  ;;  %v2491_v30 = vmax.f32 %v1770_v22, 0.0  ;;  %v2634_v6 = vmax.f32 %v2343_v5, 0.0  ;;  %v4093_v8 = vpop.f32.mrb[98].mxu1 }
 0x1aa   :  { %v2923_v7 = vadd.f32 %v2922_v62, %v2633_v52  ;;  %v2346_v13 = vpop.f32.mrb[99].mxu1  ;;  %v2637_v23 = vmax.f32 %v4093_v8, 0.0 }
 0x1ab   :  { %v2756_v36 = vadd.f32 %v2755_v28, %v2754_v15  ;;  %v2761_v39 = vadd.f32 %v2760_v29, %v2491_v30  ;;  %v2635_v15 = vmax.f32 %v2346_v13, 0.0  ;;  %v4096_v33 = vpop.f32.mrb[100].mxu1 }
 0x1ac   :  { %v2924_v35 = vadd.f32 %v2923_v7, %v2634_v6 }
 0x1ad   :  { %v2945_v47 = vmul.f32 0.00390625, %v2756_v36  ;;  %v2762_v49 = vadd.f32 %v2761_v39, %v2492_v38  ;;  %v3952_v50 = vpop.f32.mrb[104].mxu0  ;;  %v2359_v36 = vpop.f32.mrb[101].mxu1 }
 0x1ae   :  { %v1783_v51 = vpop.f32.mrb[105].mxu0  ;;  %v2496_v11 = vmax.f32 %v3952_v50, 0.0  ;;  %v2925_v25 = vadd.f32 %v2924_v35, %v2635_v15  ;;  %v2638_v38 = vmax.f32 %v2359_v36, 0.0  ;;  %v4097_v42 = vpop.f32.mrb[102].mxu1 }
 0x1af   :  { %v2958_v54 = vpack.c.bf16 %v2945_v47, %v2945_v47  ;;  %v2494_v55 = vmax.f32 %v1783_v51, 0.0  ;;  %v2763_v57 = vadd.f32 %v2762_v49, %v2493_v48  ;;  %v3953_v58 = vpop.f32.mrb[106].mxu0  ;;  %v2362_v46 = vpop.f32.mrb[103].mxu1  ;;  %v2640_v47 = vmax.f32 %v4096_v33, 0.0 }
 0x1b0   :  { %v1786_v61 = vpop.f32.mrb[107].mxu0  ;;  %v2497_v16 = vmax.f32 %v3953_v58, 0.0  ;;  %v2926_v32 = vadd.f32 %v2925_v25, %v2636_v14  ;;  %v2639_v49 = vmax.f32 %v2362_v46, 0.0 }
 0x1b1   :  { %v2990_v2 = vunpack.c.l.b16 %v2958_v54  ;;  %v2764_v3 = vadd.f32 %v2763_v57, %v2494_v55  ;;  %v2495_v4 = vmax.f32 %v1786_v61, 0.0  ;;  %v2641_v54 = vmax.f32 %v4097_v42, 0.0 }
 0x1b2   :  { %v2927_v39 = vadd.f32 %v2926_v32, %v2637_v23 }
 0x1b3   :  { %v4977_v9 = vsel %vm2998_vm3, %v2990_v2, %v4958_v0  ;;  %v2765_v12 = vadd.f32 %v2764_v3, %v2495_v4  ;;  %v4100_v2 = vpop.f32.mrb[104].mxu1 }
 0x1b4   :  { %v2928_v48 = vadd.f32 %v2927_v39, %v2638_v38  ;;  %v2375_v5 = vpop.f32.mrb[105].mxu1  ;;  %v2644_v14 = vmax.f32 %v4100_v2, 0.0 }
 0x1b5   :  { %v2766_v18 = vadd.f32 %v2765_v12, %v2496_v11  ;;  %v3956_v19 = vpop.f32.mrb[108].mxu0  ;;  %v2642_v6 = vmax.f32 %v2375_v5, 0.0  ;;  %v4101_v8 = vpop.f32.mrb[106].mxu1 }
 0x1b6   :  { %v1799_v22 = vpop.f32.mrb[109].mxu0  ;;  %v2500_v43 = vmax.f32 %v3956_v19, 0.0  ;;  %v2929_v55 = vadd.f32 %v2928_v48, %v2639_v49  ;;  %v2378_v13 = vpop.f32.mrb[107].mxu1  ;;  %v2645_v23 = vmax.f32 %v4101_v8, 0.0 }
 0x1b7   :  { %v2498_v28 = vmax.f32 %v1799_v22, 0.0  ;;  %v2767_v29 = vadd.f32 %v2766_v18, %v2497_v16  ;;  %v3957_v30 = vpop.f32.mrb[110].mxu0  ;;  %v2643_v15 = vmax.f32 %v2378_v13, 0.0 }
 0x1b8   :  { %v1802_v31 = vpop.f32.mrb[111].mxu0  ;;  %v2501_v50 = vmax.f32 %v3957_v30, 0.0  ;;  %v2930_v1 = vadd.f32 %v2929_v55, %v2640_v47 }
 0x1b9   :  { %v2768_v0 = vadd.f32 %v2767_v29, %v2498_v28  ;;  %v2499_v34 = vmax.f32 %v1802_v31, 0.0 }
 0x1ba   :  { %v2931_v7 = vadd.f32 %v2930_v1, %v2641_v54 }
 0x1bb   :  { %v2769_v45 = vadd.f32 %v2768_v0, %v2499_v34 }
 0x1bc   :  { %v2932_v35 = vadd.f32 %v2931_v7, %v2642_v6 }
 0x1bd   :  { %v2770_v51 = vadd.f32 %v2769_v45, %v2500_v43  ;;  %v3960_v52 = vpop.f32.mrb[112].mxu0 }
 0x1be   :  { %v1815_v53 = vpop.f32.mrb[113].mxu0  ;;  %v2504_v11 = vmax.f32 %v3960_v52, 0.0  ;;  %v2933_v25 = vadd.f32 %v2932_v35, %v2643_v15 }
 0x1bf   :  { %v2502_v57 = vmax.f32 %v1815_v53, 0.0  ;;  %v2771_v58 = vadd.f32 %v2770_v51, %v2501_v50  ;;  %v3961_v61 = vpop.f32.mrb[114].mxu0 }
 0x1c0   :  { %v1818_v62 = vpop.f32.mrb[115].mxu0  ;;  %v2505_v16 = vmax.f32 %v3961_v61, 0.0  ;;  %v2934_v32 = vadd.f32 %v2933_v25, %v2644_v14 }
 0x1c1   :  { %v2772_v3 = vadd.f32 %v2771_v58, %v2502_v57  ;;  %v2503_v4 = vmax.f32 %v1818_v62, 0.0 }
 0x1c2   :  { %v4979_v34 = vadd.f32 %v2934_v32, %v2645_v23 }
 0x1c3   :  { %v2773_v12 = vadd.f32 %v2772_v3, %v2503_v4 }
 0x1c5   :  { %v2774_v18 = vadd.f32 %v2773_v12, %v2504_v11  ;;  %v3964_v19 = vpop.f32.mrb[116].mxu0 }
 0x1c6   :  { %v1831_v22 = vpop.f32.mrb[117].mxu0  ;;  %v2508_v36 = vmax.f32 %v3964_v19, 0.0 }
 0x1c7   :  { %v2506_v28 = vmax.f32 %v1831_v22, 0.0  ;;  %v2775_v29 = vadd.f32 %v2774_v18, %v2505_v16  ;;  %v3965_v30 = vpop.f32.mrb[118].mxu0 }
 0x1c8   :  { %v1834_v31 = vpop.f32.mrb[119].mxu0  ;;  %v2509_v39 = vmax.f32 %v3965_v30, 0.0 }
 0x1c9   :  { %v2776_v33 = vadd.f32 %v2775_v29, %v2506_v28  ;;  %v2507_v0 = vmax.f32 %v1834_v31, 0.0 }
 0x1cb   :  { %v2777_v38 = vadd.f32 %v2776_v33, %v2507_v0 }
 0x1cd   :  { %v2778_v42 = vadd.f32 %v2777_v38, %v2508_v36  ;;  %v3968_v43 = vpop.f32.mrb[120].mxu0 }
 0x1ce   :  { %v1847_v45 = vpop.f32.mrb[121].mxu0  ;;  %v2512_v52 = vmax.f32 %v3968_v43, 0.0 }
 0x1cf   :  { %v2510_v46 = vmax.f32 %v1847_v45, 0.0  ;;  %v2779_v47 = vadd.f32 %v2778_v42, %v2509_v39  ;;  %v3969_v48 = vpop.f32.mrb[122].mxu0 }
 0x1d0   :  { %v1850_v49 = vpop.f32.mrb[123].mxu0  ;;  %v2513_v54 = vmax.f32 %v3969_v48, 0.0 }
 0x1d1   :  { %v2780_v50 = vadd.f32 %v2779_v47, %v2510_v46  ;;  %v2511_v51 = vmax.f32 %v1850_v49, 0.0 }
 0x1d3   :  { %v2781_v53 = vadd.f32 %v2780_v50, %v2511_v51 }
 0x1d5   :  { %v2782_v55 = vadd.f32 %v2781_v53, %v2512_v52  ;;  %v3972_v57 = vpop.f32.mrb[124].mxu0 }
 0x1d6   :  { %v1863_v58 = vpop.f32.mrb[125].mxu0  ;;  %v2516_v5 = vmax.f32 %v3972_v57, 0.0 }
 0x1d7   :  { %v2514_v61 = vmax.f32 %v1863_v58, 0.0  ;;  %v2783_v62 = vadd.f32 %v2782_v55, %v2513_v54  ;;  %v3973_v1 = vpop.f32.mrb[126].mxu0 }
 0x1d8   :  { %v1866_v2 = vpop.f32.mrb[127].mxu0  ;;  %v2517_v7 = vmax.f32 %v3973_v1, 0.0 }
 0x1d9   :  { %v2784_v3 = vadd.f32 %v2783_v62, %v2514_v61  ;;  %v2515_v4 = vmax.f32 %v1866_v2, 0.0 }
 0x1db   :  { %v2785_v6 = vadd.f32 %v2784_v3, %v2515_v4 }
 0x1dd   :  { %v2786_v8 = vadd.f32 %v2785_v6, %v2516_v5  ;;  %v3976_v11 = vpop.f32.mrb[128].mxu0 }
 0x1de   :  { %v1879_v12 = vpop.f32.mrb[129].mxu0  ;;  %v2520_v22 = vmax.f32 %v3976_v11, 0.0 }
 0x1df   :  { %v2787_v13 = vadd.f32 %v2786_v8, %v2517_v7  ;;  %v3977_v14 = vpop.f32.mrb[130].mxu0  ;;  %v2518_v16 = vmax.f32 %v1879_v12, 0.0 }
 0x1e0   :  { %v1882_v35 = vpop.f32.mrb[131].mxu0  ;;  %v2521_v28 = vmax.f32 %v3977_v14, 0.0 }
 0x1e1   :  { %v2788_v15 = vrot.slane %v2787_v13, 4  ;;  %v2519_v18 = vmax.f32 %v1882_v35, 0.0 }
 0x1e3   :  { %v2789_v19 = vadd.f32 %v2788_v15, %v2787_v13  ;;  %v2794_v23 = vadd.f32 %v2519_v18, %v2518_v16 }
 0x1e5   :  { %v2790_v25 = vrot.slane %v2789_v19, 2  ;;  %v2795_v29 = vadd.f32 %v2794_v23, %v2520_v22  ;;  %v3980_v30 = vpop.f32.mrb[132].mxu0 }
 0x1e6   :  { %v1895_v31 = vpop.f32.mrb[133].mxu0  ;;  %v2524_v46 = vmax.f32 %v3980_v30, 0.0 }
 0x1e7   :  { %v2791_v32 = vadd.f32 %v2790_v25, %v2789_v19  ;;  %v2522_v33 = vmax.f32 %v1895_v31, 0.0  ;;  %v2796_v0 = vadd.f32 %v2795_v29, %v2521_v28  ;;  %v3981_v36 = vpop.f32.mrb[134].mxu0 }
 0x1e8   :  { %v1898_v38 = vpop.f32.mrb[135].mxu0  ;;  %v2525_v49 = vmax.f32 %v3981_v36, 0.0 }
 0x1e9   :  { %v2792_v39 = vrot.slane %v2791_v32, 1  ;;  %v2797_v42 = vadd.f32 %v2796_v0, %v2522_v33  ;;  %v2523_v43 = vmax.f32 %v1898_v38, 0.0 }
 0x1eb   :  { %v2793_v45 = vadd.f32 %v2792_v39, %v2791_v32  ;;  %v2798_v47 = vadd.f32 %v2797_v42, %v2523_v43  ;;  %v2538_v39 = vmax.f32 %v4855_v20, 0.0  ;;  %v2539_v43 = vmax.f32 %v4861_v24, 0.0 }
 0x1ec   :  { %v2544_v20 = vmax.f32 %v4874_v37, 0.0 }
 0x1ed   :  { %v2946_v48 = vmul.f32 0.00390625, %v2793_v45  ;;  %v2799_v50 = vadd.f32 %v2798_v47, %v2524_v46  ;;  %v3984_v51 = vpop.f32.mrb[136].mxu0  ;;  %v2540_v46 = vmax.f32 %v4853_v17, 0.0  ;;  %v2545_v17 = vmax.f32 %v4879_v41, 0.0 }
 0x1ee   :  { %v1911_v52 = vpop.f32.mrb[137].mxu0  ;;  %v2528_v3 = vmax.f32 %v3984_v51, 0.0  ;;  %v2549_v41 = vmax.f32 %v4899_v60, 0.0 }
 0x1ef   :  { %v2959_v53 = vpack.c.bf16 %v2946_v48, %v2946_v48  ;;  %v2526_v54 = vmax.f32 %v1911_v52, 0.0  ;;  %v2800_v55 = vadd.f32 %v2799_v50, %v2525_v49  ;;  %v3985_v57 = vpop.f32.mrb[138].mxu0  ;;  %v2541_v48 = vmax.f32 %v4858_v21, 0.0 }
 0x1f0   :  { %v1914_v58 = vpop.f32.mrb[139].mxu0  ;;  %v2529_v5 = vmax.f32 %v3985_v57, 0.0  ;;  %v2542_v50 = vmax.f32 %v4876_v40, 0.0  ;;  %v2543_v52 = vmax.f32 %v4882_v44, 0.0  ;;  %v2936_v57 = vrot.slane %v4979_v34, 4 }
 0x1f1   :  { %v2991_v61 = vunpack.c.l.b16 %v2959_v53  ;;  %v2801_v62 = vadd.f32 %v2800_v55, %v2526_v54  ;;  %v2527_v1 = vmax.f32 %v1914_v58, 0.0  ;;  %v2862_v54 = vrot.slane %v4950_v10, 4 }
 0x1f2   :  { %v2899_v55 = vrot.slane %v4964_v27, 4  ;;  %v2546_v40 = vmax.f32 %v4896_v59, 0.0 }
 0x1f3   :  { %v4982_v2 = vsel %vm3000_vm4, %v2991_v61, %v4977_v9  ;;  %v2802_v4 = vadd.f32 %v2801_v62, %v2527_v1  ;;  %v2863_v21 = vadd.f32 %v2862_v54, %v4950_v10  ;;  %v2937_v62 = vadd.f32 %v2936_v57, %v4979_v34  ;;  %v4322_v54 = vld [vmem:[%s5100_s6 + $0x30] sm:$0xff]  }
 0x1f4   :  { %v2900_v61 = vadd.f32 %v2899_v55, %v4964_v27  ;;  %v2547_v1 = vmax.f32 %v4902_v63, 0.0 }
 0x1f5   :  { %v2803_v6 = vadd.f32 %v2802_v4, %v2528_v3  ;;  %v3988_v7 = vpop.f32.mrb[140].mxu0  ;;  %v2864_v3 = vrot.slane %v2863_v21, 2  ;;  %v2548_v4 = vmax.f32 %v4893_v56, 0.0 }
 0x1f6   :  { %v1927_v8 = vpop.f32.mrb[141].mxu0  ;;  %v2532_v16 = vmax.f32 %v3988_v7, 0.0  ;;  %v2938_v7 = vrot.slane %v2937_v62, 2 }
 0x1f7   :  { %v2530_v11 = vmax.f32 %v1927_v8, 0.0  ;;  %v2804_v12 = vadd.f32 %v2803_v6, %v2529_v5  ;;  %v3989_v13 = vpop.f32.mrb[142].mxu0  ;;  %v2901_v5 = vrot.slane %v2900_v61, 2  ;;  %v2865_v10 = vadd.f32 %v2864_v3, %v2863_v21  ;;  %v3663_v21 = vld [vmem:[%s5103_s5] ss:$0 sm:$0xff] }
 0x1f8   :  { %v1930_v14 = vpop.f32.mrb[143].mxu0  ;;  %v2533_v19 = vmax.f32 %v3989_v13, 0.0  ;;  %v4324_v3 = vld [vmem:[%s5102_s8] sm:$0xff]  }
 0x1f9   :  { %v2805_v35 = vadd.f32 %v2804_v12, %v2530_v11  ;;  %v2531_v15 = vmax.f32 %v1930_v14, 0.0  ;;  %v2902_v11 = vadd.f32 %v2901_v5, %v2900_v61  ;;  %v2939_v12 = vadd.f32 %v2938_v7, %v2937_v62  ;;  %v4325_v5 = vld [vmem:[%s5102_s8 + $0x8] sm:$0xff]   ;;  %v4327_v7 = vld [vmem:[%s5102_s8 + $0x18] sm:$0xff]  }
 0x1fa   :  { %v2866_v13 = vrot.slane %v2865_v10, 1 }
 0x1fb   :  { %v2806_v18 = vadd.f32 %v2805_v35, %v2531_v15  ;;  %v2903_v14 = vrot.slane %v2902_v11, 1  ;;  %v2940_v35 = vrot.slane %v2939_v12, 1 }
 0x1fc   :  { %v2867_v15 = vadd.f32 %v2866_v13, %v2865_v10  ;;  %v4330_v10 = vld [vmem:[%s5102_s8 + $0x30] sm:$0xff]  }
 0x1fd   :  { %v2807_v22 = vadd.f32 %v2806_v18, %v2532_v16  ;;  %v3992_v23 = vpop.f32.mrb[144].mxu0  ;;  %v2904_v16 = vadd.f32 %v2903_v14, %v2902_v11  ;;  %v2941_v56 = vadd.f32 %v2940_v35, %v2939_v12  ;;  %v4331_v11 = vld [vmem:[%s5102_s8 + $0x38] sm:$0xff]  }
 0x1fe   :  { %v1943_v25 = vpop.f32.mrb[145].mxu0  ;;  %v2536_v33 = vmax.f32 %v3992_v23, 0.0 }
 0x1ff   :  { %v2534_v9 = vmax.f32 %v1943_v25, 0.0  ;;  %v2808_v28 = vadd.f32 %v2807_v22, %v2533_v19  ;;  %v3993_v29 = vpop.f32.mrb[146].mxu0  ;;  %v2948_v22 = vmul.f32 0.00390625, %v2867_v15  ;;  %v2949_v23 = vmul.f32 0.00390625, %v2904_v16 }
 0x200   :  { %v1946_v30 = vpop.f32.mrb[147].mxu0  ;;  %v2537_v36 = vmax.f32 %v3993_v29, 0.0  ;;  %v2950_v60 = vmul.f32 0.00390625, %v2941_v56 }
 0x201   :  { %v2809_v31 = vadd.f32 %v2808_v28, %v2534_v9  ;;  %v2535_v32 = vmax.f32 %v1946_v30, 0.0  ;;  %v2961_v28 = vpack.c.bf16 %v2948_v22, %v2948_v22  ;;  %v2962_v29 = vpack.c.bf16 %v2949_v23, %v2949_v23 }
 0x203   :  { %v2810_v0 = vadd.f32 %v2809_v31, %v2535_v32  ;;  %v2963_v31 = vpack.c.bf16 %v2950_v60, %v2950_v60 }
 0x205   :  { %v2811_v38 = vadd.f32 %v2810_v0, %v2536_v33  ;;  %v2993_v33 = vunpack.c.l.b16 %v2961_v28  ;;  %v2994_v0 = vunpack.c.l.b16 %v2962_v29 }
 0x207   :  { %v2812_v42 = vadd.f32 %v2811_v38, %v2537_v36  ;;  %v2995_v38 = vunpack.c.l.b16 %v2963_v31 }
 0x209   :  { %v2813_v45 = vadd.f32 %v2812_v42, %v2538_v39 }
 0x20b   :  { %v2814_v47 = vadd.f32 %v2813_v45, %v2539_v43  ;;  %v4314_v45 = vld [vmem:[%s5099_s3] sm:$0xff]  }
 0x20d   :  { %v2815_v49 = vadd.f32 %v2814_v47, %v2540_v46  ;;  %v4315_v47 = vld [vmem:[%s5099_s3 + $0x8] sm:$0xff]  }
 0x20f   :  { %v2816_v51 = vadd.f32 %v2815_v49, %v2541_v48  ;;  %v4316_v48 = vld [vmem:[%s5100_s6] sm:$0xff]   ;;  %v4317_v49 = vld [vmem:[%s5100_s6 + $0x8] sm:$0xff]  }
 0x211   :  { %v2817_v53 = vadd.f32 %v2816_v51, %v2542_v50  ;;  %v4318_v50 = vld [vmem:[%s5100_s6 + $0x10] sm:$0xff]   ;;  %v4319_v51 = vld [vmem:[%s5100_s6 + $0x18] sm:$0xff]  }
 0x213   :  { %v2818_v24 = vadd.f32 %v2817_v53, %v2543_v52  ;;  %v4320_v52 = vld [vmem:[%s5100_s6 + $0x20] sm:$0xff]   ;;  %v4321_v53 = vld [vmem:[%s5100_s6 + $0x28] sm:$0xff]  }
 0x215   :  { %v2819_v58 = vadd.f32 %v2818_v24, %v2544_v20  ;;  %v4323_v20 = vld [vmem:[%s5100_s6 + $0x38] sm:$0xff]  }
 0x217   :  { %v2820_v44 = vadd.f32 %v2819_v58, %v2545_v17 }
 0x219   :  { %v2821_v37 = vadd.f32 %v2820_v44, %v2546_v40 }
 0x21b   :  { %v2822_v6 = vadd.f32 %v2821_v37, %v2547_v1 }
 0x21d   :  { %v2823_v8 = vadd.f32 %v2822_v6, %v2548_v4  ;;  %v4326_v6 = vld [vmem:[%s5102_s8 + $0x10] sm:$0xff]  }
 0x21f   :  { %v2824_v59 = vadd.f32 %v2823_v8, %v2549_v41  ;;  %v4328_v41 = vld [vmem:[%s5102_s8 + $0x20] sm:$0xff]   ;;  %v4329_v8 = vld [vmem:[%s5102_s8 + $0x28] sm:$0xff]  }
 0x221   :  { %v2825_v27 = vrot.slane %v2824_v59, 4 }
 0x223   :  { %v2826_v34 = vadd.f32 %v2825_v27, %v2824_v59  ;;  %v3664_v59 = vld [vmem:[%s5104_s7] ss:$0 sm:$0xff] }
 0x225   :  { %v2827_v63 = vrot.slane %v2826_v34, 2 }
 0x227   :  { %v2828_v18 = vadd.f32 %v2827_v63, %v2826_v34 }
 0x229   :  { %v2829_v19 = vrot.slane %v2828_v18, 1 }
 0x22b   :  { %v2830_v25 = vadd.f32 %v2829_v19, %v2828_v18 }
 0x22d   :  { %v2947_v9 = vmul.f32 0.00390625, %v2830_v25 }
 0x22f   :  { %v2960_v30 = vpack.c.bf16 %v2947_v9, %v2947_v9 }
 0x231   :  { %v2992_v32 = vunpack.c.l.b16 %v2960_v30 }
 0x233   :  { %v3003_v36 = vsel %vm3002_vm5, %v2992_v32, %v4982_v2  ;;  %v2951_v2 = vld [vmem:[%s5101_s1] sm:$0xf] }
 0x234   :  { %v3005_v39 = vsel %vm3004_vm6, %v2993_v33, %v3003_v36 }
 0x235   :  { %v3007_v42 = vsel %vm3006_vm7, %v2994_v0, %v3005_v39 }
 0x236   :  { %v3009_v43 = vsel %vm3008_vm8, %v2995_v38, %v3007_v42 }
 0x237   :  { %v3010_v46 = vpack.c.b16 %v3009_v43, %v3009_v43 }
 0x239   :  { %4119 = vmatmul.mubr.bf16.vlgmr.msra.gmra.mrb[108].mxu1 %v3010_v46 }
 0x23a   :  { %4123 = vmatpush3.bf16.msra.mxu1 %v4314_v45  ;;  %4126 = vmatprep.mubr.msk.bf16.mxu1 %vm4333_vm2, %v4332_v26 }
 0x23b   :  { %4124 = vmatprep.subr.bf16.mxu1 %v4332_v26 }
 0x23e   :  { %4125 = vmatpush3.bf16.msra.mxu1 %v4315_v47 }
 0x23f   :  { %4130 = vmatprep.subr.bf16.mxu1 %v4332_v26 }
 0x241   :  { %4127 = vmatmul.mubr.msk.bf16.vlgmr.msra.gmra.mrb[112].mxu1 %vm948_vm0, %v2951_v2 }
 0x242   :  { %4131 = vmatpush3.bf16.msra.mxu1 %v4316_v48  ;;  %4146 = vmatprep.mubr.msk.bf16.mxu1 %vm4333_vm2, %v4332_v26 }
 0x243   :  { %4132 = vmatprep.subr.bf16.mxu1 %v4332_v26 }
 0x246   :  { %4133 = vmatpush3.bf16.msra.mxu1 %v4317_v49 }
 0x247   :  { %4134 = vmatprep.subr.bf16.mxu1 %v4332_v26 }
 0x24a   :  { %4135 = vmatpush3.bf16.msra.mxu1 %v4318_v50 }
 0x24b   :  { %4136 = vmatprep.subr.bf16.mxu1 %v4332_v26 }
 0x24e   :  { %4137 = vmatpush3.bf16.msra.mxu1 %v4319_v51 }
 0x24f   :  { %4138 = vmatprep.subr.bf16.mxu1 %v4332_v26 }
 0x252   :  { %4139 = vmatpush3.bf16.msra.mxu1 %v4320_v52 }
 0x253   :  { %4140 = vmatprep.subr.bf16.mxu1 %v4332_v26 }
 0x256   :  { %4141 = vmatpush3.bf16.msra.mxu1 %v4321_v53 }
 0x257   :  { %4142 = vmatprep.subr.bf16.mxu1 %v4332_v26 }
 0x25a   :  { %4143 = vmatpush3.bf16.msra.mxu1 %v4322_v54 }
 0x25b   :  { %4144 = vmatprep.subr.bf16.mxu1 %v4332_v26 }
 0x25e   :  { %4145 = vmatpush3.bf16.msra.mxu1 %v4323_v20 }
 0x25f   :  { %4150 = vmatprep.subr.bf16.mxu1 %v4332_v26 }
 0x30c   :  { %v3094_v55 = vpop.f32.mrb[108].mxu1 }
 0x30d   :  { %v4120_v24 = vpop.f32.mrb[109].mxu1 }
 0x30e   :  { %v3097_v57 = vpop.f32.mrb[110].mxu1 }
 0x30f   :  { %v4121_v17 = vpop.f32.mrb[111].mxu1 }
 0x314   :  { %v3149_v58 = vpop.f32.mrb[112].mxu1 }
 0x315   :  { %v3150_v40 = vadd.f32 %v3149_v58, %v3094_v55  ;;  %v4128_v61 = vpop.f32.mrb[113].mxu1 }
 0x316   :  { %v3152_v44 = vpop.f32.mrb[114].mxu1 }
 0x317   :  { %v3162_v62 = vadd.f32 %v3663_v21, %v3150_v40  ;;  %v4129_v1 = vpop.f32.mrb[115].mxu1 }
 0x319   :  { %v3163_v37 = vmax.f32 %v3162_v62, 0.0 }
 0x31b   :  { %v3164_v4 = vpack.c.bf16 %v3163_v37, %v3163_v37 }
 0x31d   :  { %4147 = vmatmul.mubr.bf16.vlgmr.msra.gmra.mrb[116].mxu1 %v3164_v4 }
 0x31e   :  { %4151 = vmatpush3.bf16.msra.mxu1 %v4324_v3  ;;  %4166 = vmatprep.mubr.msk.bf16.mxu1 %vm4333_vm2, %v4332_v26 }
 0x31f   :  { %4152 = vmatprep.subr.bf16.mxu1 %v4332_v26 }
 0x322   :  { %4153 = vmatpush3.bf16.msra.mxu1 %v4325_v5 }
 0x323   :  { %4154 = vmatprep.subr.bf16.mxu1 %v4332_v26 }
 0x326   :  { %4155 = vmatpush3.bf16.msra.mxu1 %v4326_v6 }
 0x327   :  { %4156 = vmatprep.subr.bf16.mxu1 %v4332_v26 }
 0x32a   :  { %4157 = vmatpush3.bf16.msra.mxu1 %v4327_v7 }
 0x32b   :  { %4158 = vmatprep.subr.bf16.mxu1 %v4332_v26 }
 0x32e   :  { %4159 = vmatpush3.bf16.msra.mxu1 %v4328_v41 }
 0x32f   :  { %4160 = vmatprep.subr.bf16.mxu1 %v4332_v26 }
 0x332   :  { %4161 = vmatpush3.bf16.msra.mxu1 %v4329_v8 }
 0x333   :  { %4162 = vmatprep.subr.bf16.mxu1 %v4332_v26 }
 0x336   :  { %4163 = vmatpush3.bf16.msra.mxu1 %v4330_v10 }
 0x337   :  { %4164 = vmatprep.subr.bf16.mxu1 %v4332_v26  ;;  %v3673_v26 = vld [vmem:[%s5105_s9] ss:$0 sm:$0xff] }
 0x33a   :  { %4165 = vmatpush3.bf16.msra.mxu1 %v4331_v11 }
 0x3f0   :  { %v3270_v12 = vpop.f32.mrb[116].mxu1 }
 0x3f1   :  { %v3271_v27 = vadd.f32 %v3664_v59, %v3270_v12  ;;  %v4148_v13 = vpop.f32.mrb[117].mxu1 }
 0x3f2   :  { %v3273_v14 = vpop.f32.mrb[118].mxu1 }
 0x3f3   :  { %v3276_v34 = vmax.f32 %v3271_v27, 0.0  ;;  %v4149_v35 = vpop.f32.mrb[119].mxu1 }
 0x3f5   :  { %v3277_v63 = vpack.c.bf16 %v3276_v34, %v3276_v34 }
 0x3f7   :  { %4167 = vmatmul.mubr.bf16.vlgmr.msra.gmra.mrb[120].mxu1 %v3277_v63 }
 0x4ca   :  { %v3383_v15 = vpop.f32.mrb[120].mxu1 }
 0x4cb   :  { %v3384_v16 = vadd.f32 %v3673_v26, %v3383_v15  ;;  %v4168_v18 = vpop.f32.mrb[121].mxu1 }
 0x4cc   :  { %v3386_v56 = vpop.f32.mrb[122].mxu1 }
 0x4cd   :  { %3389 = vst [vmem:[%s5106_s10] sm:$0xff] %v3384_v16  ;;  %v4169_v19 = vpop.f32.mrb[123].mxu1 }

</bundles_post_ra>
